<compile_context>
chip_gen: v6e
topology: v6e:2x2x1
jax: 0.10.0
libtpu: 0.0.40
codegen_flags: <defaults>
</compile_context>

<pallas_src>
import functools

import jax
import jax.numpy as jnp
from jax.experimental import pallas as pl
from jax.experimental.pallas import tpu as pltpu

LN_EPS = 1e-5


def _layer_norm(h, gamma, beta):
    mu = jnp.mean(h, axis=-1, keepdims=True)
    var = jnp.mean(jnp.square(h - mu), axis=-1, keepdims=True)
    return (h - mu) * jax.lax.rsqrt(var + LN_EPS) * gamma + beta


def _conv1d_relu(a32, w_ref, b, first_row, last_row, fused):
    """k=3 'same' Conv1d + bias + ReLU over flattened (Bb*T, Cin) rows.

    a32: (M, Cin) float32 activations.
    Shifted neighbours are zeroed at t==0 / t==T-1 which realizes the zero
    'same' padding and blocks cross-sequence leakage in the folded slab.
    Matmul operands are cast to bf16 right before the dot (f32 accumulation).
    """
    a_prev = jnp.where(first_row, 0.0, jnp.roll(a32, 1, axis=0))    # x[t-1]
    a_next = jnp.where(last_row, 0.0, jnp.roll(a32, -1, axis=0))    # x[t+1]
    bf = jnp.bfloat16
    if fused:
        # Cin multiple of 128: lane-concat the taps, single wide MXU dot.
        stacked = jnp.concatenate(
            [a_prev.astype(bf), a32.astype(bf), a_next.astype(bf)], axis=-1)
        y = jnp.dot(stacked, w_ref[...], preferred_element_type=jnp.float32)
    else:
        # Narrow Cin: three accumulating dots avoid the cross-lane concat and
        # the (M, 3*Cin) temp (better on v7x's MRB, fine on v5e/v6e).
        y = jnp.dot(a_prev.astype(bf), w_ref[0],
                    preferred_element_type=jnp.float32)
        y = y + jnp.dot(a32.astype(bf), w_ref[1],
                        preferred_element_type=jnp.float32)
        y = y + jnp.dot(a_next.astype(bf), w_ref[2],
                        preferred_element_type=jnp.float32)
    return jnp.maximum(y + b, 0.0)                                  # conv + ReLU


def _conv_decoder_kernel(x_ref, w1_ref, b1_ref, g1_ref, be1_ref,
                         w2_ref, b2_ref, g2_ref, be2_ref,
                         wp_ref, bp_ref, o_ref, *, scalar_out, fused):
    Bb, T, E = x_ref.shape
    M = Bb * T
    x = x_ref[...].reshape(M, E).astype(jnp.float32)

    # Per-sequence position masks (iota along T axis; no integer modulo).
    t_idx = jax.lax.broadcasted_iota(jnp.int32, (Bb, T, 1), 1).reshape(M, 1)
    first_row = t_idx == 0
    last_row = t_idx == T - 1

    # conv1 + ReLU, LayerNorm1   (dropout1 = identity in eval)
    h = _conv1d_relu(x, w1_ref, b1_ref[...], first_row, last_row, fused)
    h = _layer_norm(h, g1_ref[...], be1_ref[...])
    # conv2 + ReLU, LayerNorm2   (dropout2 = identity in eval)
    h = _conv1d_relu(h, w2_ref, b2_ref[...], first_row, last_row, fused)
    h = _layer_norm(h, g2_ref[...], be2_ref[...])

    if scalar_out:
        # output_dim == 1: VPU multiply + lane reduction (no N=1 MXU matmul),
        # stored as a single lane-dense (1, 1, Bb*T) row per grid step.
        hw = h * wp_ref[...]                                    # (M, H) f32
        out = jnp.sum(hw, axis=-1).reshape(1, M) + bp_ref[...]  # (1, M)
        o_ref[...] = out.reshape(1, 1, M).astype(o_ref.dtype)
    else:
        # TODO(synk): O < 128 leaves this store lane-masked; pad O (or keep O
        #             on sublanes) if this branch becomes hot.
        out = jnp.dot(h.astype(jnp.bfloat16), wp_ref[...],
                      preferred_element_type=jnp.float32) + bp_ref[...]
        o_ref[...] = out.reshape(Bb, T, -1).astype(o_ref.dtype)


def _vmem_capacity_bytes():
    try:
        cap = getattr(pltpu.get_tpu_info(), "vmem_capacity_bytes", None)
        if cap:
            return int(cap)
    except Exception:
        pass
    return 64 << 20          # conservative default (v7x per-TC VMEM)


def _vmem_bytes_estimate(Bb, T, E, H, O, fused):
    """Rough live-bytes estimate for one grid step."""
    M = Bb * T
    BF, F32 = 2, 4
    Cmax = max(E, H)
    O1 = max(O, 1)
    b = 2 * M * E * BF                                        # 2x-buffered bf16 x slab
    b += 2 * M * Cmax * F32                                   # shifted h_prev/h_next copies
    b += (3 * M * Cmax * BF) if fused else (M * Cmax * BF)    # bf16 matmul operand temps
    b += 3 * M * H * F32                                      # f32 accum + h + LN temps
    b += 2 * M * O1 * F32                                     # 2x-buffered output block
    b += (3 * E * H + 3 * H * H) * BF                         # conv weights (single-buffered)
    b += (12 * H + 4 * O1) * F32                              # biases / LN params / proj
    return b


def _pick_block_batch(B, T, E, H, O, fused, budget):
    """Largest Bb dividing B whose working set fits `budget`, keeping at least
    min(B, 4) grid steps (DMA overlap; work for both v7x TCs), preferring an
    even number of steps."""
    divisors = [d for d in range(1, B + 1) if B % d == 0]
    min_grid = min(B, 4)
    fitting = [d for d in divisors
               if B // d >= min_grid
               and _vmem_bytes_estimate(d, T, E, H, O, fused) <= budget]
    if not fitting:
        return 1
    even = [d for d in fitting if (B // d) % 2 == 0]
    return max(even) if even else max(fitting)


def conv_decoder_forward(x, params, *, block_batch=None):
    """x: (B, T, E) float.  Returns (B, T) if output_dim == 1 else
    log-probabilities of shape (B, T, output_dim)."""
    B, T, E = x.shape
    w1, b1, g1, be1, w2, b2, g2, be2, wp, bp = params
    H = w1.shape[-1]
    O = wp.shape[-1]
    scalar_out = (O == 1)
    fused = (E % 128 == 0) and (H % 128 == 0)

    cap = _vmem_capacity_bytes()
    budget = min(cap // 3, 28 << 20)
    Bb = block_batch if block_batch is not None else _pick_block_batch(
        B, T, E, H, O, fused, budget)
    assert B % Bb == 0, (B, Bb)
    grid = (B // Bb,)
    est = _vmem_bytes_estimate(Bb, T, E, H, O, fused)
    vmem_limit = int(max(16 << 20,
                         min(max(32 << 20, 2 * est), cap - (8 << 20))))

    # bf16 matmul operands; f32 accumulation stays inside the kernel.
    x_in = x.astype(jnp.bfloat16)
    if fused:
        w1_in = w1.reshape(3 * E, H).astype(jnp.bfloat16)   # [tap t-1; t; t+1]
        w2_in = w2.reshape(3 * H, H).astype(jnp.bfloat16)
    else:
        w1_in = w1.astype(jnp.bfloat16)                     # (3, E, H)
        w2_in = w2.astype(jnp.bfloat16)                     # (3, H, H)

    if scalar_out:
        wp_in = wp.reshape(1, H)                 # f32 row vector for VPU path
        bp_in = bp.reshape(1, 1)
        out_shape = jax.ShapeDtypeStruct((grid[0], 1, Bb * T), jnp.float32)
        out_spec = pl.BlockSpec((1, 1, Bb * T), lambda i: (i, 0, 0))
    else:
        wp_in = wp.astype(jnp.bfloat16)
        bp_in = bp
        out_shape = jax.ShapeDtypeStruct((B, T, O), jnp.float32)
        out_spec = pl.BlockSpec((Bb, T, O), lambda i: (i, 0, 0))

    kernel = functools.partial(_conv_decoder_kernel,
                               scalar_out=scalar_out, fused=fused)
    consts = (w1_in, b1, g1, be1, w2_in, b2, g2, be2, wp_in, bp_in)

    def run(single_buffer_consts):
        def const_spec(a):
            nd = a.ndim
            idx = lambda i, _nd=nd: (0,) * _nd
            if single_buffer_consts:
                # Constant block index -> 2-deep buffering only wastes VMEM.
                return pl.BlockSpec(a.shape, idx, pipeline_mode=pl.Buffered(1))
            return pl.BlockSpec(a.shape, idx)

        return pl.pallas_call(
            kernel,
            out_shape=out_shape,
            grid_spec=pltpu.PrefetchScalarGridSpec(
                num_scalar_prefetch=0,
                grid=grid,
                in_specs=[pl.BlockSpec((Bb, T, E), lambda i: (i, 0, 0))]
                         + [const_spec(a) for a in consts],
                out_specs=out_spec,
            ),
            compiler_params=pltpu.CompilerParams(
                # Disjoint output blocks per step -> safe to shard across TCs.
                dimension_semantics=("parallel",),
                vmem_limit_bytes=vmem_limit),
        )(x_in, *consts)

    try:
        out = run(True)
    except Exception:
        # Conservative fallback if Buffered(1) is rejected by this jax build.
        out = run(False)

    if scalar_out:
        return out.reshape(B, T)                 # .squeeze(dim=2) equivalent
    return jax.nn.log_softmax(out, axis=-1)      # output_dim > 1 branch


def init_params(key, encoder_embed_dim, hidden_dim, output_dim):
    ks = jax.random.split(key, 6)
    E, H, O = encoder_embed_dim, hidden_dim, output_dim
    w1 = 0.1 * jax.random.normal(ks[0], (3, E, H), jnp.float32)   # conv1 (K,Cin,Cout)
    b1 = 0.1 * jax.random.normal(ks[1], (1, H), jnp.float32)
    g1 = jnp.ones((1, H), jnp.float32)
    be1 = jnp.zeros((1, H), jnp.float32)
    w2 = 0.1 * jax.random.normal(ks[2], (3, H, H), jnp.float32)   # conv2 (K,Cin,Cout)
    b2 = 0.1 * jax.random.normal(ks[3], (1, H), jnp.float32)
    g2 = jnp.ones((1, H), jnp.float32)
    be2 = jnp.zeros((1, H), jnp.float32)
    wp = 0.1 * jax.random.normal(ks[4], (H, O), jnp.float32)      # proj weight (transposed)
    bp = 0.1 * jax.random.normal(ks[5], (1, O), jnp.float32)
    return (w1, b1, g1, be1, w2, b2, g2, be2, wp, bp)


def reference_forward(x, params):
    """Pure-JAX f32 reference (true conv via lax.conv) for correctness check."""
    w1, b1, g1, be1, w2, b2, g2, be2, wp, bp = params

    def conv(x_btc, w_taps, b):
        w = jnp.transpose(w_taps, (2, 1, 0))       # (Cout, Cin, K), torch OIH
        y = jax.lax.conv_general_dilated(
            jnp.transpose(x_btc, (0, 2, 1)), w,
            window_strides=(1,), padding=((1, 1),),
            dimension_numbers=("NCH", "OIH", "NCH"))
        return jnp.transpose(y, (0, 2, 1)) + b

    h = jnp.maximum(conv(x, w1, b1), 0.0)
    h = _layer_norm(h, g1, be1)
    h = jnp.maximum(conv(h, w2, b2), 0.0)
    h = _layer_norm(h, g2, be2)
    out = h @ wp + bp
    if wp.shape[1] == 1:
        return jnp.squeeze(out, axis=2)
    return jax.nn.log_softmax(out, axis=-1)


if __name__ == "__main__":
    # Small shapes: batch=2, seq=16, encoder_embed_dim=32, hidden=32
    B, T, E, H = 2, 16, 32, 32
    key = jax.random.PRNGKey(0)
    kx, kp1, kp2 = jax.random.split(key, 3)
    x = jax.random.normal(kx, (B, T, E), jnp.float32)

    # output_dim == 1 (module default): scalar duration per frame.
    params1 = init_params(kp1, E, H, 1)
    out1 = jax.block_until_ready(conv_decoder_forward(x, params1))
    ref1 = reference_forward(x, params1)
    assert out1.shape == (B, T), out1.shape
    assert jnp.allclose(out1, ref1, atol=2e-2, rtol=2e-2), (
        "scalar path mismatch, max abs diff = "
        f"{float(jnp.max(jnp.abs(out1 - ref1)))}")

    # output_dim > 1: log-probability path.
    O = 4
    params2 = init_params(kp2, E, H, O)
    out2 = jax.block_until_ready(conv_decoder_forward(x, params2))
    ref2 = reference_forward(x, params2)
    assert out2.shape == (B, T, O), out2.shape
    assert jnp.allclose(out2, ref2, atol=2e-2, rtol=2e-2), (
        "log-softmax path mismatch, max abs diff = "
        f"{float(jnp.max(jnp.abs(out2 - ref2)))}")

    print("KERNEL_OK")
</pallas_src>

<mosaic_0001>
module attributes {stable_mosaic.version = 11 : i64} {
  func.func @_conv_decoder_kernel(%arg0: i32, %arg1: memref<1x16x32xbf16, #tpu.memory_space<vmem>>, %arg2: memref<3x32x32xbf16, #tpu.memory_space<vmem>>, %arg3: memref<1x32xf32, #tpu.memory_space<vmem>>, %arg4: memref<1x32xf32, #tpu.memory_space<vmem>>, %arg5: memref<1x32xf32, #tpu.memory_space<vmem>>, %arg6: memref<3x32x32xbf16, #tpu.memory_space<vmem>>, %arg7: memref<1x32xf32, #tpu.memory_space<vmem>>, %arg8: memref<1x32xf32, #tpu.memory_space<vmem>>, %arg9: memref<1x32xf32, #tpu.memory_space<vmem>>, %arg10: memref<1x32xf32, #tpu.memory_space<vmem>>, %arg11: memref<1x1xf32, #tpu.memory_space<vmem>>, %arg12: memref<1x1x16xf32, #tpu.memory_space<vmem>>) attributes {dimension_semantics = [#tpu.dimension_semantics<parallel>], iteration_bounds = array<i64: 2>, scalar_prefetch = 0 : i64, scratch_operands = 0 : i64, tpu.core_type = #tpu.core_type<tc>, window_params = [{transform_indices = @transform_0, window_bounds = array<i64: 1, 16, 32>}, {pipeline_mode = #tpu.pipeline_mode<synchronous>, transform_indices = @transform_1, window_bounds = array<i64: 3, 32, 32>}, {pipeline_mode = #tpu.pipeline_mode<synchronous>, transform_indices = @transform_2, window_bounds = array<i64: 1, 32>}, {pipeline_mode = #tpu.pipeline_mode<synchronous>, transform_indices = @transform_3, window_bounds = array<i64: 1, 32>}, {pipeline_mode = #tpu.pipeline_mode<synchronous>, transform_indices = @transform_4, window_bounds = array<i64: 1, 32>}, {pipeline_mode = #tpu.pipeline_mode<synchronous>, transform_indices = @transform_5, window_bounds = array<i64: 3, 32, 32>}, {pipeline_mode = #tpu.pipeline_mode<synchronous>, transform_indices = @transform_6, window_bounds = array<i64: 1, 32>}, {pipeline_mode = #tpu.pipeline_mode<synchronous>, transform_indices = @transform_7, window_bounds = array<i64: 1, 32>}, {pipeline_mode = #tpu.pipeline_mode<synchronous>, transform_indices = @transform_8, window_bounds = array<i64: 1, 32>}, {pipeline_mode = #tpu.pipeline_mode<synchronous>, transform_indices = @transform_9, window_bounds = array<i64: 1, 32>}, {pipeline_mode = #tpu.pipeline_mode<synchronous>, transform_indices = @transform_10, window_bounds = array<i64: 1, 1>}, {transform_indices = @transform_11, window_bounds = array<i64: 1, 1, 16>}]} {
    %c0 = arith.constant 0 : index
    %c0_0 = arith.constant 0 : index
    %c0_1 = arith.constant 0 : index
    %0 = vector.load %arg1[%c0, %c0_0, %c0_1] : memref<1x16x32xbf16, #tpu.memory_space<vmem>>, vector<1x16x32xbf16>
    %1 = vector.shape_cast %0 : vector<1x16x32xbf16> to vector<16x32xbf16>
    %2 = arith.extf %1 : vector<16x32xbf16> to vector<16x32xf32>
    %3 = tpu.iota {dimensions = array<i32: 1>} : vector<1x16x1xi32>
    %4 = vector.shape_cast %3 : vector<1x16x1xi32> to vector<16x1xi32>
    %c0_i32 = arith.constant 0 : i32
    %5 = vector.broadcast %c0_i32 : i32 to vector<16x1xi32>
    %6 = arith.cmpi eq, %4, %5 : vector<16x1xi32>
    %c15_i32 = arith.constant 15 : i32
    %7 = vector.broadcast %c15_i32 : i32 to vector<16x1xi32>
    %8 = arith.cmpi eq, %4, %7 : vector<16x1xi32>
    %c0_2 = arith.constant 0 : index
    %c0_3 = arith.constant 0 : index
    %9 = vector.load %arg3[%c0_2, %c0_3] : memref<1x32xf32, #tpu.memory_space<vmem>>, vector<1x32xf32>
    %10 = vector.extract_strided_slice %2 {offsets = [15, 0], sizes = [1, 32], strides = [1, 1]} : vector<16x32xf32> to vector<1x32xf32>
    %11 = vector.extract_strided_slice %2 {offsets = [0, 0], sizes = [15, 32], strides = [1, 1]} : vector<16x32xf32> to vector<15x32xf32>
    %12 = tpu.concatenate %10, %11 in 0 : vector<1x32xf32>, vector<15x32xf32> -> vector<16x32xf32>
    %cst = arith.constant 0.000000e+00 : f32
    %13 = vector.shape_cast %6 : vector<16x1xi1> to vector<16x1xi1>
    %14 = vector.broadcast %13 : vector<16x1xi1> to vector<16x32xi1>
    %15 = vector.broadcast %cst : f32 to vector<16x32xf32>
    %16 = arith.select %14, %15, %12 : vector<16x32xi1>, vector<16x32xf32>
    %17 = vector.extract_strided_slice %2 {offsets = [1, 0], sizes = [15, 32], strides = [1, 1]} : vector<16x32xf32> to vector<15x32xf32>
    %18 = vector.extract_strided_slice %2 {offsets = [0, 0], sizes = [1, 32], strides = [1, 1]} : vector<16x32xf32> to vector<1x32xf32>
    %19 = tpu.concatenate %17, %18 in 0 : vector<15x32xf32>, vector<1x32xf32> -> vector<16x32xf32>
    %cst_4 = arith.constant 0.000000e+00 : f32
    %20 = vector.shape_cast %8 : vector<16x1xi1> to vector<16x1xi1>
    %21 = vector.broadcast %20 : vector<16x1xi1> to vector<16x32xi1>
    %22 = vector.broadcast %cst_4 : f32 to vector<16x32xf32>
    %23 = arith.select %21, %22, %19 : vector<16x32xi1>, vector<16x32xf32>
    %24 = arith.truncf %16 : vector<16x32xf32> to vector<16x32xbf16>
    %c0_5 = arith.constant 0 : index
    %c0_6 = arith.constant 0 : index
    %c0_7 = arith.constant 0 : index
    %25 = vector.load %arg2[%c0_5, %c0_6, %c0_7] : memref<3x32x32xbf16, #tpu.memory_space<vmem>>, vector<1x32x32xbf16>
    %26 = vector.shape_cast %25 : vector<1x32x32xbf16> to vector<32x32xbf16>
    %cst_8 = arith.constant dense<0.000000e+00> : vector<16x32xf32>
    %27 = tpu.matmul %24, %26, %cst_8 {dimension_numbers = #tpu.dot_dimension_numbers<[1], [0], [0], [1], [0, 0, 1, 1], [], []>} : vector<16x32xbf16>, vector<32x32xbf16>, vector<16x32xf32> -> vector<16x32xf32>
    %28 = arith.truncf %2 : vector<16x32xf32> to vector<16x32xbf16>
    %c1 = arith.constant 1 : index
    %c0_9 = arith.constant 0 : index
    %c0_10 = arith.constant 0 : index
    %29 = vector.load %arg2[%c1, %c0_9, %c0_10] : memref<3x32x32xbf16, #tpu.memory_space<vmem>>, vector<1x32x32xbf16>
    %30 = vector.shape_cast %29 : vector<1x32x32xbf16> to vector<32x32xbf16>
    %cst_11 = arith.constant dense<0.000000e+00> : vector<16x32xf32>
    %31 = tpu.matmul %28, %30, %cst_11 {dimension_numbers = #tpu.dot_dimension_numbers<[1], [0], [0], [1], [0, 0, 1, 1], [], []>} : vector<16x32xbf16>, vector<32x32xbf16>, vector<16x32xf32> -> vector<16x32xf32>
    %32 = arith.addf %27, %31 : vector<16x32xf32>
    %33 = arith.truncf %23 : vector<16x32xf32> to vector<16x32xbf16>
    %c2 = arith.constant 2 : index
    %c0_12 = arith.constant 0 : index
    %c0_13 = arith.constant 0 : index
    %34 = vector.load %arg2[%c2, %c0_12, %c0_13] : memref<3x32x32xbf16, #tpu.memory_space<vmem>>, vector<1x32x32xbf16>
    %35 = vector.shape_cast %34 : vector<1x32x32xbf16> to vector<32x32xbf16>
    %cst_14 = arith.constant dense<0.000000e+00> : vector<16x32xf32>
    %36 = tpu.matmul %33, %35, %cst_14 {dimension_numbers = #tpu.dot_dimension_numbers<[1], [0], [0], [1], [0, 0, 1, 1], [], []>} : vector<16x32xbf16>, vector<32x32xbf16>, vector<16x32xf32> -> vector<16x32xf32>
    %37 = arith.addf %32, %36 : vector<16x32xf32>
    %38 = vector.broadcast %9 : vector<1x32xf32> to vector<16x32xf32>
    %39 = arith.addf %37, %38 : vector<16x32xf32>
    %cst_15 = arith.constant 0.000000e+00 : f32
    %40 = vector.broadcast %cst_15 : f32 to vector<16x32xf32>
    %41 = arith.maximumf %39, %40 : vector<16x32xf32>
    %c0_16 = arith.constant 0 : index
    %c0_17 = arith.constant 0 : index
    %42 = vector.load %arg4[%c0_16, %c0_17] : memref<1x32xf32, #tpu.memory_space<vmem>>, vector<1x32xf32>
    %c0_18 = arith.constant 0 : index
    %c0_19 = arith.constant 0 : index
    %43 = vector.load %arg5[%c0_18, %c0_19] : memref<1x32xf32, #tpu.memory_space<vmem>>, vector<1x32xf32>
    %cst_20 = arith.constant dense<0.000000e+00> : vector<16xf32>
    %44 = vector.multi_reduction <add>, %41, %cst_20 [1] : vector<16x32xf32> to vector<16xf32>
    %45 = vector.shape_cast %44 : vector<16xf32> to vector<16x1xf32>
    %cst_21 = arith.constant 3.200000e+01 : f32
    %46 = vector.broadcast %cst_21 : f32 to vector<16x1xf32>
    %47 = arith.divf %45, %46 : vector<16x1xf32>
    %48 = vector.broadcast %47 : vector<16x1xf32> to vector<16x32xf32>
    %49 = arith.subf %41, %48 : vector<16x32xf32>
    %50 = arith.mulf %49, %49 : vector<16x32xf32>
    %cst_22 = arith.constant dense<0.000000e+00> : vector<16xf32>
    %51 = vector.multi_reduction <add>, %50, %cst_22 [1] : vector<16x32xf32> to vector<16xf32>
    %52 = vector.shape_cast %51 : vector<16xf32> to vector<16x1xf32>
    %cst_23 = arith.constant 3.200000e+01 : f32
    %53 = vector.broadcast %cst_23 : f32 to vector<16x1xf32>
    %54 = arith.divf %52, %53 : vector<16x1xf32>
    %55 = vector.broadcast %47 : vector<16x1xf32> to vector<16x32xf32>
    %56 = arith.subf %41, %55 : vector<16x32xf32>
    %cst_24 = arith.constant 9.99999974E-6 : f32
    %57 = vector.broadcast %cst_24 : f32 to vector<16x1xf32>
    %58 = arith.addf %54, %57 : vector<16x1xf32>
    %59 = math.rsqrt %58 : vector<16x1xf32>
    %60 = vector.broadcast %59 : vector<16x1xf32> to vector<16x32xf32>
    %61 = arith.mulf %56, %60 : vector<16x32xf32>
    %62 = vector.broadcast %42 : vector<1x32xf32> to vector<16x32xf32>
    %63 = arith.mulf %61, %62 : vector<16x32xf32>
    %64 = vector.broadcast %43 : vector<1x32xf32> to vector<16x32xf32>
    %65 = arith.addf %63, %64 : vector<16x32xf32>
    %c0_25 = arith.constant 0 : index
    %c0_26 = arith.constant 0 : index
    %66 = vector.load %arg7[%c0_25, %c0_26] : memref<1x32xf32, #tpu.memory_space<vmem>>, vector<1x32xf32>
    %67 = vector.extract_strided_slice %65 {offsets = [15, 0], sizes = [1, 32], strides = [1, 1]} : vector<16x32xf32> to vector<1x32xf32>
    %68 = vector.extract_strided_slice %65 {offsets = [0, 0], sizes = [15, 32], strides = [1, 1]} : vector<16x32xf32> to vector<15x32xf32>
    %69 = tpu.concatenate %67, %68 in 0 : vector<1x32xf32>, vector<15x32xf32> -> vector<16x32xf32>
    %cst_27 = arith.constant 0.000000e+00 : f32
    %70 = vector.shape_cast %6 : vector<16x1xi1> to vector<16x1xi1>
    %71 = vector.broadcast %70 : vector<16x1xi1> to vector<16x32xi1>
    %72 = vector.broadcast %cst_27 : f32 to vector<16x32xf32>
    %73 = arith.select %71, %72, %69 : vector<16x32xi1>, vector<16x32xf32>
    %74 = vector.extract_strided_slice %65 {offsets = [1, 0], sizes = [15, 32], strides = [1, 1]} : vector<16x32xf32> to vector<15x32xf32>
    %75 = vector.extract_strided_slice %65 {offsets = [0, 0], sizes = [1, 32], strides = [1, 1]} : vector<16x32xf32> to vector<1x32xf32>
    %76 = tpu.concatenate %74, %75 in 0 : vector<15x32xf32>, vector<1x32xf32> -> vector<16x32xf32>
    %cst_28 = arith.constant 0.000000e+00 : f32
    %77 = vector.shape_cast %8 : vector<16x1xi1> to vector<16x1xi1>
    %78 = vector.broadcast %77 : vector<16x1xi1> to vector<16x32xi1>
    %79 = vector.broadcast %cst_28 : f32 to vector<16x32xf32>
    %80 = arith.select %78, %79, %76 : vector<16x32xi1>, vector<16x32xf32>
    %81 = arith.truncf %73 : vector<16x32xf32> to vector<16x32xbf16>
    %c0_29 = arith.constant 0 : index
    %c0_30 = arith.constant 0 : index
    %c0_31 = arith.constant 0 : index
    %82 = vector.load %arg6[%c0_29, %c0_30, %c0_31] : memref<3x32x32xbf16, #tpu.memory_space<vmem>>, vector<1x32x32xbf16>
    %83 = vector.shape_cast %82 : vector<1x32x32xbf16> to vector<32x32xbf16>
    %cst_32 = arith.constant dense<0.000000e+00> : vector<16x32xf32>
    %84 = tpu.matmul %81, %83, %cst_32 {dimension_numbers = #tpu.dot_dimension_numbers<[1], [0], [0], [1], [0, 0, 1, 1], [], []>} : vector<16x32xbf16>, vector<32x32xbf16>, vector<16x32xf32> -> vector<16x32xf32>
    %85 = arith.truncf %65 : vector<16x32xf32> to vector<16x32xbf16>
    %c1_33 = arith.constant 1 : index
    %c0_34 = arith.constant 0 : index
    %c0_35 = arith.constant 0 : index
    %86 = vector.load %arg6[%c1_33, %c0_34, %c0_35] : memref<3x32x32xbf16, #tpu.memory_space<vmem>>, vector<1x32x32xbf16>
    %87 = vector.shape_cast %86 : vector<1x32x32xbf16> to vector<32x32xbf16>
    %cst_36 = arith.constant dense<0.000000e+00> : vector<16x32xf32>
    %88 = tpu.matmul %85, %87, %cst_36 {dimension_numbers = #tpu.dot_dimension_numbers<[1], [0], [0], [1], [0, 0, 1, 1], [], []>} : vector<16x32xbf16>, vector<32x32xbf16>, vector<16x32xf32> -> vector<16x32xf32>
    %89 = arith.addf %84, %88 : vector<16x32xf32>
    %90 = arith.truncf %80 : vector<16x32xf32> to vector<16x32xbf16>
    %c2_37 = arith.constant 2 : index
    %c0_38 = arith.constant 0 : index
    %c0_39 = arith.constant 0 : index
    %91 = vector.load %arg6[%c2_37, %c0_38, %c0_39] : memref<3x32x32xbf16, #tpu.memory_space<vmem>>, vector<1x32x32xbf16>
    %92 = vector.shape_cast %91 : vector<1x32x32xbf16> to vector<32x32xbf16>
    %cst_40 = arith.constant dense<0.000000e+00> : vector<16x32xf32>
    %93 = tpu.matmul %90, %92, %cst_40 {dimension_numbers = #tpu.dot_dimension_numbers<[1], [0], [0], [1], [0, 0, 1, 1], [], []>} : vector<16x32xbf16>, vector<32x32xbf16>, vector<16x32xf32> -> vector<16x32xf32>
    %94 = arith.addf %89, %93 : vector<16x32xf32>
    %95 = vector.broadcast %66 : vector<1x32xf32> to vector<16x32xf32>
    %96 = arith.addf %94, %95 : vector<16x32xf32>
    %cst_41 = arith.constant 0.000000e+00 : f32
    %97 = vector.broadcast %cst_41 : f32 to vector<16x32xf32>
    %98 = arith.maximumf %96, %97 : vector<16x32xf32>
    %c0_42 = arith.constant 0 : index
    %c0_43 = arith.constant 0 : index
    %99 = vector.load %arg8[%c0_42, %c0_43] : memref<1x32xf32, #tpu.memory_space<vmem>>, vector<1x32xf32>
    %c0_44 = arith.constant 0 : index
    %c0_45 = arith.constant 0 : index
    %100 = vector.load %arg9[%c0_44, %c0_45] : memref<1x32xf32, #tpu.memory_space<vmem>>, vector<1x32xf32>
    %cst_46 = arith.constant dense<0.000000e+00> : vector<16xf32>
    %101 = vector.multi_reduction <add>, %98, %cst_46 [1] : vector<16x32xf32> to vector<16xf32>
    %102 = vector.shape_cast %101 : vector<16xf32> to vector<16x1xf32>
    %cst_47 = arith.constant 3.200000e+01 : f32
    %103 = vector.broadcast %cst_47 : f32 to vector<16x1xf32>
    %104 = arith.divf %102, %103 : vector<16x1xf32>
    %105 = vector.broadcast %104 : vector<16x1xf32> to vector<16x32xf32>
    %106 = arith.subf %98, %105 : vector<16x32xf32>
    %107 = arith.mulf %106, %106 : vector<16x32xf32>
    %cst_48 = arith.constant dense<0.000000e+00> : vector<16xf32>
    %108 = vector.multi_reduction <add>, %107, %cst_48 [1] : vector<16x32xf32> to vector<16xf32>
    %109 = vector.shape_cast %108 : vector<16xf32> to vector<16x1xf32>
    %cst_49 = arith.constant 3.200000e+01 : f32
    %110 = vector.broadcast %cst_49 : f32 to vector<16x1xf32>
    %111 = arith.divf %109, %110 : vector<16x1xf32>
    %112 = vector.broadcast %104 : vector<16x1xf32> to vector<16x32xf32>
    %113 = arith.subf %98, %112 : vector<16x32xf32>
    %cst_50 = arith.constant 9.99999974E-6 : f32
    %114 = vector.broadcast %cst_50 : f32 to vector<16x1xf32>
    %115 = arith.addf %111, %114 : vector<16x1xf32>
    %116 = math.rsqrt %115 : vector<16x1xf32>
    %117 = vector.broadcast %116 : vector<16x1xf32> to vector<16x32xf32>
    %118 = arith.mulf %113, %117 : vector<16x32xf32>
    %119 = vector.broadcast %99 : vector<1x32xf32> to vector<16x32xf32>
    %120 = arith.mulf %118, %119 : vector<16x32xf32>
    %121 = vector.broadcast %100 : vector<1x32xf32> to vector<16x32xf32>
    %122 = arith.addf %120, %121 : vector<16x32xf32>
    %c0_51 = arith.constant 0 : index
    %c0_52 = arith.constant 0 : index
    %123 = vector.load %arg10[%c0_51, %c0_52] : memref<1x32xf32, #tpu.memory_space<vmem>>, vector<1x32xf32>
    %124 = vector.broadcast %123 : vector<1x32xf32> to vector<16x32xf32>
    %125 = arith.mulf %122, %124 : vector<16x32xf32>
    %cst_53 = arith.constant dense<0.000000e+00> : vector<16xf32>
    %126 = vector.multi_reduction <add>, %125, %cst_53 [1] : vector<16x32xf32> to vector<16xf32>
    %127 = vector.shape_cast %126 : vector<16xf32> to vector<1x16xf32>
    %c0_54 = arith.constant 0 : index
    %c0_55 = arith.constant 0 : index
    %128 = vector.load %arg11[%c0_54, %c0_55] : memref<1x1xf32, #tpu.memory_space<vmem>>, vector<1x1xf32>
    %129 = vector.broadcast %128 : vector<1x1xf32> to vector<1x16xf32>
    %130 = arith.addf %127, %129 : vector<1x16xf32>
    %131 = vector.shape_cast %130 : vector<1x16xf32> to vector<1x1x16xf32>
    %c0_56 = arith.constant 0 : index
    %c0_57 = arith.constant 0 : index
    %c0_58 = arith.constant 0 : index
    %132 = vector.load %arg12[%c0_56, %c0_57, %c0_58] : memref<1x1x16xf32, #tpu.memory_space<vmem>>, vector<1x1x16xf32>
    tpu.vector_store %arg12[%c0_56, %c0_57, %c0_58], %131 {strides = array<i32>} : memref<1x1x16xf32, #tpu.memory_space<vmem>>, vector<1x1x16xf32>,
    return
  }
  func.func @transform_0(%arg0: i32) -> (i32, i32, i32) {
    %c0_i32 = arith.constant 0 : i32
    %c0_i32_0 = arith.constant 0 : i32
    %c0_i32_1 = arith.constant 0 : i32
    return %arg0, %c0_i32, %c0_i32_0 : i32, i32, i32
  }
  func.func @transform_1(%arg0: i32) -> (i32, i32, i32) {
    %c0_i32 = arith.constant 0 : i32
    %c0_i32_0 = arith.constant 0 : i32
    %c0_i32_1 = arith.constant 0 : i32
    %c0_i32_2 = arith.constant 0 : i32
    return %c0_i32, %c0_i32_0, %c0_i32_1 : i32, i32, i32
  }
  func.func @transform_2(%arg0: i32) -> (i32, i32) {
    %c0_i32 = arith.constant 0 : i32
    %c0_i32_0 = arith.constant 0 : i32
    %c0_i32_1 = arith.constant 0 : i32
    return %c0_i32, %c0_i32_0 : i32, i32
  }
  func.func @transform_3(%arg0: i32) -> (i32, i32) {
    %c0_i32 = arith.constant 0 : i32
    %c0_i32_0 = arith.constant 0 : i32
    %c0_i32_1 = arith.constant 0 : i32
    return %c0_i32, %c0_i32_0 : i32, i32
  }
  func.func @transform_4(%arg0: i32) -> (i32, i32) {
    %c0_i32 = arith.constant 0 : i32
    %c0_i32_0 = arith.constant 0 : i32
    %c0_i32_1 = arith.constant 0 : i32
    return %c0_i32, %c0_i32_0 : i32, i32
  }
  func.func @transform_5(%arg0: i32) -> (i32, i32, i32) {
    %c0_i32 = arith.constant 0 : i32
    %c0_i32_0 = arith.constant 0 : i32
    %c0_i32_1 = arith.constant 0 : i32
    %c0_i32_2 = arith.constant 0 : i32
    return %c0_i32, %c0_i32_0, %c0_i32_1 : i32, i32, i32
  }
  func.func @transform_6(%arg0: i32) -> (i32, i32) {
    %c0_i32 = arith.constant 0 : i32
    %c0_i32_0 = arith.constant 0 : i32
    %c0_i32_1 = arith.constant 0 : i32
    return %c0_i32, %c0_i32_0 : i32, i32
  }
  func.func @transform_7(%arg0: i32) -> (i32, i32) {
    %c0_i32 = arith.constant 0 : i32
    %c0_i32_0 = arith.constant 0 : i32
    %c0_i32_1 = arith.constant 0 : i32
    return %c0_i32, %c0_i32_0 : i32, i32
  }
  func.func @transform_8(%arg0: i32) -> (i32, i32) {
    %c0_i32 = arith.constant 0 : i32
    %c0_i32_0 = arith.constant 0 : i32
    %c0_i32_1 = arith.constant 0 : i32
    return %c0_i32, %c0_i32_0 : i32, i32
  }
  func.func @transform_9(%arg0: i32) -> (i32, i32) {
    %c0_i32 = arith.constant 0 : i32
    %c0_i32_0 = arith.constant 0 : i32
    %c0_i32_1 = arith.constant 0 : i32
    return %c0_i32, %c0_i32_0 : i32, i32
  }
  func.func @transform_10(%arg0: i32) -> (i32, i32) {
    %c0_i32 = arith.constant 0 : i32
    %c0_i32_0 = arith.constant 0 : i32
    %c0_i32_1 = arith.constant 0 : i32
    return %c0_i32, %c0_i32_0 : i32, i32
  }
  func.func @transform_11(%arg0: i32) -> (i32, i32, i32) {
    %c0_i32 = arith.constant 0 : i32
    %c0_i32_0 = arith.constant 0 : i32
    %c0_i32_1 = arith.constant 0 : i32
    return %arg0, %c0_i32, %c0_i32_0 : i32, i32, i32
  }
}

module attributes {stable_mosaic.version = 11 : i64} {
  func.func @_conv_decoder_kernel(%arg0: i32, %arg1: memref<1x16x32xbf16, #tpu.memory_space<vmem>>, %arg2: memref<3x32x32xbf16, #tpu.memory_space<vmem>>, %arg3: memref<1x32xf32, #tpu.memory_space<vmem>>, %arg4: memref<1x32xf32, #tpu.memory_space<vmem>>, %arg5: memref<1x32xf32, #tpu.memory_space<vmem>>, %arg6: memref<3x32x32xbf16, #tpu.memory_space<vmem>>, %arg7: memref<1x32xf32, #tpu.memory_space<vmem>>, %arg8: memref<1x32xf32, #tpu.memory_space<vmem>>, %arg9: memref<1x32xf32, #tpu.memory_space<vmem>>, %arg10: memref<1x32xf32, #tpu.memory_space<vmem>>, %arg11: memref<1x1xf32, #tpu.memory_space<vmem>>, %arg12: memref<1x1x16xf32, #tpu.memory_space<vmem>>) attributes {dimension_semantics = [#tpu.dimension_semantics<parallel>], iteration_bounds = array<i64: 2>, scalar_prefetch = 0 : i64, scratch_operands = 0 : i64, tpu.core_type = #tpu.core_type<tc>, window_params = [{transform_indices = @transform_0, window_bounds = array<i64: 1, 16, 32>}, {pipeline_mode = #tpu.pipeline_mode<synchronous>, transform_indices = @transform_1, window_bounds = array<i64: 3, 32, 32>}, {pipeline_mode = #tpu.pipeline_mode<synchronous>, transform_indices = @transform_2, window_bounds = array<i64: 1, 32>}, {pipeline_mode = #tpu.pipeline_mode<synchronous>, transform_indices = @transform_3, window_bounds = array<i64: 1, 32>}, {pipeline_mode = #tpu.pipeline_mode<synchronous>, transform_indices = @transform_4, window_bounds = array<i64: 1, 32>}, {pipeline_mode = #tpu.pipeline_mode<synchronous>, transform_indices = @transform_5, window_bounds = array<i64: 3, 32, 32>}, {pipeline_mode = #tpu.pipeline_mode<synchronous>, transform_indices = @transform_6, window_bounds = array<i64: 1, 32>}, {pipeline_mode = #tpu.pipeline_mode<synchronous>, transform_indices = @transform_7, window_bounds = array<i64: 1, 32>}, {pipeline_mode = #tpu.pipeline_mode<synchronous>, transform_indices = @transform_8, window_bounds = array<i64: 1, 32>}, {pipeline_mode = #tpu.pipeline_mode<synchronous>, transform_indices = @transform_9, window_bounds = array<i64: 1, 32>}, {pipeline_mode = #tpu.pipeline_mode<synchronous>, transform_indices = @transform_10, window_bounds = array<i64: 1, 1>}, {transform_indices = @transform_11, window_bounds = array<i64: 1, 1, 16>}]} {
    %c0 = arith.constant 0 : index
    %c0_0 = arith.constant 0 : index
    %c0_1 = arith.constant 0 : index
    %0 = vector.load %arg1[%c0, %c0_0, %c0_1] : memref<1x16x32xbf16, #tpu.memory_space<vmem>>, vector<1x16x32xbf16>
    %1 = vector.shape_cast %0 : vector<1x16x32xbf16> to vector<16x32xbf16>
    %2 = arith.extf %1 : vector<16x32xbf16> to vector<16x32xf32>
    %3 = tpu.iota {dimensions = array<i32: 1>} : vector<1x16x1xi32>
    %4 = vector.shape_cast %3 : vector<1x16x1xi32> to vector<16x1xi32>
    %c0_i32 = arith.constant 0 : i32
    %5 = vector.broadcast %c0_i32 : i32 to vector<16x1xi32>
    %6 = arith.cmpi eq, %4, %5 : vector<16x1xi32>
    %c15_i32 = arith.constant 15 : i32
    %7 = vector.broadcast %c15_i32 : i32 to vector<16x1xi32>
    %8 = arith.cmpi eq, %4, %7 : vector<16x1xi32>
    %c0_2 = arith.constant 0 : index
    %c0_3 = arith.constant 0 : index
    %9 = vector.load %arg3[%c0_2, %c0_3] : memref<1x32xf32, #tpu.memory_space<vmem>>, vector<1x32xf32>
    %10 = vector.extract_strided_slice %2 {offsets = [15, 0], sizes = [1, 32], strides = [1, 1]} : vector<16x32xf32> to vector<1x32xf32>
    %11 = vector.extract_strided_slice %2 {offsets = [0, 0], sizes = [15, 32], strides = [1, 1]} : vector<16x32xf32> to vector<15x32xf32>
    %12 = tpu.concatenate %10, %11 in 0 : vector<1x32xf32>, vector<15x32xf32> -> vector<16x32xf32>
    %cst = arith.constant 0.000000e+00 : f32
    %13 = vector.shape_cast %6 : vector<16x1xi1> to vector<16x1xi1>
    %14 = vector.broadcast %13 : vector<16x1xi1> to vector<16x32xi1>
    %15 = vector.broadcast %cst : f32 to vector<16x32xf32>
    %16 = arith.select %14, %15, %12 : vector<16x32xi1>, vector<16x32xf32>
    %17 = vector.extract_strided_slice %2 {offsets = [1, 0], sizes = [15, 32], strides = [1, 1]} : vector<16x32xf32> to vector<15x32xf32>
    %18 = vector.extract_strided_slice %2 {offsets = [0, 0], sizes = [1, 32], strides = [1, 1]} : vector<16x32xf32> to vector<1x32xf32>
    %19 = tpu.concatenate %17, %18 in 0 : vector<15x32xf32>, vector<1x32xf32> -> vector<16x32xf32>
    %cst_4 = arith.constant 0.000000e+00 : f32
    %20 = vector.shape_cast %8 : vector<16x1xi1> to vector<16x1xi1>
    %21 = vector.broadcast %20 : vector<16x1xi1> to vector<16x32xi1>
    %22 = vector.broadcast %cst_4 : f32 to vector<16x32xf32>
    %23 = arith.select %21, %22, %19 : vector<16x32xi1>, vector<16x32xf32>
    %24 = arith.truncf %16 : vector<16x32xf32> to vector<16x32xbf16>
    %c0_5 = arith.constant 0 : index
    %c0_6 = arith.constant 0 : index
    %c0_7 = arith.constant 0 : index
    %25 = vector.load %arg2[%c0_5, %c0_6, %c0_7] : memref<3x32x32xbf16, #tpu.memory_space<vmem>>, vector<1x32x32xbf16>
    %26 = vector.shape_cast %25 : vector<1x32x32xbf16> to vector<32x32xbf16>
    %cst_8 = arith.constant dense<0.000000e+00> : vector<16x32xf32>
    %27 = tpu.matmul %24, %26, %cst_8 {dimension_numbers = #tpu.dot_dimension_numbers<[1], [0], [0], [1], [0, 0, 1, 1], [], []>} : vector<16x32xbf16>, vector<32x32xbf16>, vector<16x32xf32> -> vector<16x32xf32>
    %28 = arith.truncf %2 : vector<16x32xf32> to vector<16x32xbf16>
    %c1 = arith.constant 1 : index
    %c0_9 = arith.constant 0 : index
    %c0_10 = arith.constant 0 : index
    %29 = vector.load %arg2[%c1, %c0_9, %c0_10] : memref<3x32x32xbf16, #tpu.memory_space<vmem>>, vector<1x32x32xbf16>
    %30 = vector.shape_cast %29 : vector<1x32x32xbf16> to vector<32x32xbf16>
    %cst_11 = arith.constant dense<0.000000e+00> : vector<16x32xf32>
    %31 = tpu.matmul %28, %30, %cst_11 {dimension_numbers = #tpu.dot_dimension_numbers<[1], [0], [0], [1], [0, 0, 1, 1], [], []>} : vector<16x32xbf16>, vector<32x32xbf16>, vector<16x32xf32> -> vector<16x32xf32>
    %32 = arith.addf %27, %31 : vector<16x32xf32>
    %33 = arith.truncf %23 : vector<16x32xf32> to vector<16x32xbf16>
    %c2 = arith.constant 2 : index
    %c0_12 = arith.constant 0 : index
    %c0_13 = arith.constant 0 : index
    %34 = vector.load %arg2[%c2, %c0_12, %c0_13] : memref<3x32x32xbf16, #tpu.memory_space<vmem>>, vector<1x32x32xbf16>
    %35 = vector.shape_cast %34 : vector<1x32x32xbf16> to vector<32x32xbf16>
    %cst_14 = arith.constant dense<0.000000e+00> : vector<16x32xf32>
    %36 = tpu.matmul %33, %35, %cst_14 {dimension_numbers = #tpu.dot_dimension_numbers<[1], [0], [0], [1], [0, 0, 1, 1], [], []>} : vector<16x32xbf16>, vector<32x32xbf16>, vector<16x32xf32> -> vector<16x32xf32>
    %37 = arith.addf %32, %36 : vector<16x32xf32>
    %38 = vector.broadcast %9 : vector<1x32xf32> to vector<16x32xf32>
    %39 = arith.addf %37, %38 : vector<16x32xf32>
    %cst_15 = arith.constant 0.000000e+00 : f32
    %40 = vector.broadcast %cst_15 : f32 to vector<16x32xf32>
    %41 = arith.maximumf %39, %40 : vector<16x32xf32>
    %c0_16 = arith.constant 0 : index
    %c0_17 = arith.constant 0 : index
    %42 = vector.load %arg4[%c0_16, %c0_17] : memref<1x32xf32, #tpu.memory_space<vmem>>, vector<1x32xf32>
    %c0_18 = arith.constant 0 : index
    %c0_19 = arith.constant 0 : index
    %43 = vector.load %arg5[%c0_18, %c0_19] : memref<1x32xf32, #tpu.memory_space<vmem>>, vector<1x32xf32>
    %cst_20 = arith.constant dense<0.000000e+00> : vector<16xf32>
    %44 = vector.multi_reduction <add>, %41, %cst_20 [1] : vector<16x32xf32> to vector<16xf32>
    %45 = vector.shape_cast %44 : vector<16xf32> to vector<16x1xf32>
    %cst_21 = arith.constant 3.200000e+01 : f32
    %46 = vector.broadcast %cst_21 : f32 to vector<16x1xf32>
    %47 = arith.divf %45, %46 : vector<16x1xf32>
    %48 = vector.broadcast %47 : vector<16x1xf32> to vector<16x32xf32>
    %49 = arith.subf %41, %48 : vector<16x32xf32>
    %50 = arith.mulf %49, %49 : vector<16x32xf32>
    %cst_22 = arith.constant dense<0.000000e+00> : vector<16xf32>
    %51 = vector.multi_reduction <add>, %50, %cst_22 [1] : vector<16x32xf32> to vector<16xf32>
    %52 = vector.shape_cast %51 : vector<16xf32> to vector<16x1xf32>
    %cst_23 = arith.constant 3.200000e+01 : f32
    %53 = vector.broadcast %cst_23 : f32 to vector<16x1xf32>
    %54 = arith.divf %52, %53 : vector<16x1xf32>
    %55 = vector.broadcast %47 : vector<16x1xf32> to vector<16x32xf32>
    %56 = arith.subf %41, %55 : vector<16x32xf32>
    %cst_24 = arith.constant 9.99999974E-6 : f32
    %57 = vector.broadcast %cst_24 : f32 to vector<16x1xf32>
    %58 = arith.addf %54, %57 : vector<16x1xf32>
    %59 = math.rsqrt %58 : vector<16x1xf32>
    %60 = vector.broadcast %59 : vector<16x1xf32> to vector<16x32xf32>
    %61 = arith.mulf %56, %60 : vector<16x32xf32>
    %62 = vector.broadcast %42 : vector<1x32xf32> to vector<16x32xf32>
    %63 = arith.mulf %61, %62 : vector<16x32xf32>
    %64 = vector.broadcast %43 : vector<1x32xf32> to vector<16x32xf32>
    %65 = arith.addf %63, %64 : vector<16x32xf32>
    %c0_25 = arith.constant 0 : index
    %c0_26 = arith.constant 0 : index
    %66 = vector.load %arg7[%c0_25, %c0_26] : memref<1x32xf32, #tpu.memory_space<vmem>>, vector<1x32xf32>
    %67 = vector.extract_strided_slice %65 {offsets = [15, 0], sizes = [1, 32], strides = [1, 1]} : vector<16x32xf32> to vector<1x32xf32>
    %68 = vector.extract_strided_slice %65 {offsets = [0, 0], sizes = [15, 32], strides = [1, 1]} : vector<16x32xf32> to vector<15x32xf32>
    %69 = tpu.concatenate %67, %68 in 0 : vector<1x32xf32>, vector<15x32xf32> -> vector<16x32xf32>
    %cst_27 = arith.constant 0.000000e+00 : f32
    %70 = vector.shape_cast %6 : vector<16x1xi1> to vector<16x1xi1>
    %71 = vector.broadcast %70 : vector<16x1xi1> to vector<16x32xi1>
    %72 = vector.broadcast %cst_27 : f32 to vector<16x32xf32>
    %73 = arith.select %71, %72, %69 : vector<16x32xi1>, vector<16x32xf32>
    %74 = vector.extract_strided_slice %65 {offsets = [1, 0], sizes = [15, 32], strides = [1, 1]} : vector<16x32xf32> to vector<15x32xf32>
    %75 = vector.extract_strided_slice %65 {offsets = [0, 0], sizes = [1, 32], strides = [1, 1]} : vector<16x32xf32> to vector<1x32xf32>
    %76 = tpu.concatenate %74, %75 in 0 : vector<15x32xf32>, vector<1x32xf32> -> vector<16x32xf32>
    %cst_28 = arith.constant 0.000000e+00 : f32
    %77 = vector.shape_cast %8 : vector<16x1xi1> to vector<16x1xi1>
    %78 = vector.broadcast %77 : vector<16x1xi1> to vector<16x32xi1>
    %79 = vector.broadcast %cst_28 : f32 to vector<16x32xf32>
    %80 = arith.select %78, %79, %76 : vector<16x32xi1>, vector<16x32xf32>
    %81 = arith.truncf %73 : vector<16x32xf32> to vector<16x32xbf16>
    %c0_29 = arith.constant 0 : index
    %c0_30 = arith.constant 0 : index
    %c0_31 = arith.constant 0 : index
    %82 = vector.load %arg6[%c0_29, %c0_30, %c0_31] : memref<3x32x32xbf16, #tpu.memory_space<vmem>>, vector<1x32x32xbf16>
    %83 = vector.shape_cast %82 : vector<1x32x32xbf16> to vector<32x32xbf16>
    %cst_32 = arith.constant dense<0.000000e+00> : vector<16x32xf32>
    %84 = tpu.matmul %81, %83, %cst_32 {dimension_numbers = #tpu.dot_dimension_numbers<[1], [0], [0], [1], [0, 0, 1, 1], [], []>} : vector<16x32xbf16>, vector<32x32xbf16>, vector<16x32xf32> -> vector<16x32xf32>
    %85 = arith.truncf %65 : vector<16x32xf32> to vector<16x32xbf16>
    %c1_33 = arith.constant 1 : index
    %c0_34 = arith.constant 0 : index
    %c0_35 = arith.constant 0 : index
    %86 = vector.load %arg6[%c1_33, %c0_34, %c0_35] : memref<3x32x32xbf16, #tpu.memory_space<vmem>>, vector<1x32x32xbf16>
    %87 = vector.shape_cast %86 : vector<1x32x32xbf16> to vector<32x32xbf16>
    %cst_36 = arith.constant dense<0.000000e+00> : vector<16x32xf32>
    %88 = tpu.matmul %85, %87, %cst_36 {dimension_numbers = #tpu.dot_dimension_numbers<[1], [0], [0], [1], [0, 0, 1, 1], [], []>} : vector<16x32xbf16>, vector<32x32xbf16>, vector<16x32xf32> -> vector<16x32xf32>
    %89 = arith.addf %84, %88 : vector<16x32xf32>
    %90 = arith.truncf %80 : vector<16x32xf32> to vector<16x32xbf16>
    %c2_37 = arith.constant 2 : index
    %c0_38 = arith.constant 0 : index
    %c0_39 = arith.constant 0 : index
    %91 = vector.load %arg6[%c2_37, %c0_38, %c0_39] : memref<3x32x32xbf16, #tpu.memory_space<vmem>>, vector<1x32x32xbf16>
    %92 = vector.shape_cast %91 : vector<1x32x32xbf16> to vector<32x32xbf16>
    %cst_40 = arith.constant dense<0.000000e+00> : vector<16x32xf32>
    %93 = tpu.matmul %90, %92, %cst_40 {dimension_numbers = #tpu.dot_dimension_numbers<[1], [0], [0], [1], [0, 0, 1, 1], [], []>} : vector<16x32xbf16>, vector<32x32xbf16>, vector<16x32xf32> -> vector<16x32xf32>
    %94 = arith.addf %89, %93 : vector<16x32xf32>
    %95 = vector.broadcast %66 : vector<1x32xf32> to vector<16x32xf32>
    %96 = arith.addf %94, %95 : vector<16x32xf32>
    %cst_41 = arith.constant 0.000000e+00 : f32
    %97 = vector.broadcast %cst_41 : f32 to vector<16x32xf32>
    %98 = arith.maximumf %96, %97 : vector<16x32xf32>
    %c0_42 = arith.constant 0 : index
    %c0_43 = arith.constant 0 : index
    %99 = vector.load %arg8[%c0_42, %c0_43] : memref<1x32xf32, #tpu.memory_space<vmem>>, vector<1x32xf32>
    %c0_44 = arith.constant 0 : index
    %c0_45 = arith.constant 0 : index
    %100 = vector.load %arg9[%c0_44, %c0_45] : memref<1x32xf32, #tpu.memory_space<vmem>>, vector<1x32xf32>
    %cst_46 = arith.constant dense<0.000000e+00> : vector<16xf32>
    %101 = vector.multi_reduction <add>, %98, %cst_46 [1] : vector<16x32xf32> to vector<16xf32>
    %102 = vector.shape_cast %101 : vector<16xf32> to vector<16x1xf32>
    %cst_47 = arith.constant 3.200000e+01 : f32
    %103 = vector.broadcast %cst_47 : f32 to vector<16x1xf32>
    %104 = arith.divf %102, %103 : vector<16x1xf32>
    %105 = vector.broadcast %104 : vector<16x1xf32> to vector<16x32xf32>
    %106 = arith.subf %98, %105 : vector<16x32xf32>
    %107 = arith.mulf %106, %106 : vector<16x32xf32>
    %cst_48 = arith.constant dense<0.000000e+00> : vector<16xf32>
    %108 = vector.multi_reduction <add>, %107, %cst_48 [1] : vector<16x32xf32> to vector<16xf32>
    %109 = vector.shape_cast %108 : vector<16xf32> to vector<16x1xf32>
    %cst_49 = arith.constant 3.200000e+01 : f32
    %110 = vector.broadcast %cst_49 : f32 to vector<16x1xf32>
    %111 = arith.divf %109, %110 : vector<16x1xf32>
    %112 = vector.broadcast %104 : vector<16x1xf32> to vector<16x32xf32>
    %113 = arith.subf %98, %112 : vector<16x32xf32>
    %cst_50 = arith.constant 9.99999974E-6 : f32
    %114 = vector.broadcast %cst_50 : f32 to vector<16x1xf32>
    %115 = arith.addf %111, %114 : vector<16x1xf32>
    %116 = math.rsqrt %115 : vector<16x1xf32>
    %117 = vector.broadcast %116 : vector<16x1xf32> to vector<16x32xf32>
    %118 = arith.mulf %113, %117 : vector<16x32xf32>
    %119 = vector.broadcast %99 : vector<1x32xf32> to vector<16x32xf32>
    %120 = arith.mulf %118, %119 : vector<16x32xf32>
    %121 = vector.broadcast %100 : vector<1x32xf32> to vector<16x32xf32>
    %122 = arith.addf %120, %121 : vector<16x32xf32>
    %c0_51 = arith.constant 0 : index
    %c0_52 = arith.constant 0 : index
    %123 = vector.load %arg10[%c0_51, %c0_52] : memref<1x32xf32, #tpu.memory_space<vmem>>, vector<1x32xf32>
    %124 = vector.broadcast %123 : vector<1x32xf32> to vector<16x32xf32>
    %125 = arith.mulf %122, %124 : vector<16x32xf32>
    %cst_53 = arith.constant dense<0.000000e+00> : vector<16xf32>
    %126 = vector.multi_reduction <add>, %125, %cst_53 [1] : vector<16x32xf32> to vector<16xf32>
    %127 = vector.shape_cast %126 : vector<16xf32> to vector<1x16xf32>
    %c0_54 = arith.constant 0 : index
    %c0_55 = arith.constant 0 : index
    %128 = vector.load %arg11[%c0_54, %c0_55] : memref<1x1xf32, #tpu.memory_space<vmem>>, vector<1x1xf32>
    %129 = vector.broadcast %128 : vector<1x1xf32> to vector<1x16xf32>
    %130 = arith.addf %127, %129 : vector<1x16xf32>
    %131 = vector.shape_cast %130 : vector<1x16xf32> to vector<1x1x16xf32>
    %c0_56 = arith.constant 0 : index
    %c0_57 = arith.constant 0 : index
    %c0_58 = arith.constant 0 : index
    %132 = vector.load %arg12[%c0_56, %c0_57, %c0_58] : memref<1x1x16xf32, #tpu.memory_space<vmem>>, vector<1x1x16xf32>
    tpu.vector_store %arg12[%c0_56, %c0_57, %c0_58], %131 {strides = array<i32>} : memref<1x1x16xf32, #tpu.memory_space<vmem>>, vector<1x1x16xf32>,
    return
  }
  func.func @transform_0(%arg0: i32) -> (i32, i32, i32) {
    %c0_i32 = arith.constant 0 : i32
    %c0_i32_0 = arith.constant 0 : i32
    %c0_i32_1 = arith.constant 0 : i32
    return %arg0, %c0_i32, %c0_i32_0 : i32, i32, i32
  }
  func.func @transform_1(%arg0: i32) -> (i32, i32, i32) {
    %c0_i32 = arith.constant 0 : i32
    %c0_i32_0 = arith.constant 0 : i32
    %c0_i32_1 = arith.constant 0 : i32
    %c0_i32_2 = arith.constant 0 : i32
    return %c0_i32, %c0_i32_0, %c0_i32_1 : i32, i32, i32
  }
  func.func @transform_2(%arg0: i32) -> (i32, i32) {
    %c0_i32 = arith.constant 0 : i32
    %c0_i32_0 = arith.constant 0 : i32
    %c0_i32_1 = arith.constant 0 : i32
    return %c0_i32, %c0_i32_0 : i32, i32
  }
  func.func @transform_3(%arg0: i32) -> (i32, i32) {
    %c0_i32 = arith.constant 0 : i32
    %c0_i32_0 = arith.constant 0 : i32
    %c0_i32_1 = arith.constant 0 : i32
    return %c0_i32, %c0_i32_0 : i32, i32
  }
  func.func @transform_4(%arg0: i32) -> (i32, i32) {
    %c0_i32 = arith.constant 0 : i32
    %c0_i32_0 = arith.constant 0 : i32
    %c0_i32_1 = arith.constant 0 : i32
    return %c0_i32, %c0_i32_0 : i32, i32
  }
  func.func @transform_5(%arg0: i32) -> (i32, i32, i32) {
    %c0_i32 = arith.constant 0 : i32
    %c0_i32_0 = arith.constant 0 : i32
    %c0_i32_1 = arith.constant 0 : i32
    %c0_i32_2 = arith.constant 0 : i32
    return %c0_i32, %c0_i32_0, %c0_i32_1 : i32, i32, i32
  }
  func.func @transform_6(%arg0: i32) -> (i32, i32) {
    %c0_i32 = arith.constant 0 : i32
    %c0_i32_0 = arith.constant 0 : i32
    %c0_i32_1 = arith.constant 0 : i32
    return %c0_i32, %c0_i32_0 : i32, i32
  }
  func.func @transform_7(%arg0: i32) -> (i32, i32) {
    %c0_i32 = arith.constant 0 : i32
    %c0_i32_0 = arith.constant 0 : i32
    %c0_i32_1 = arith.constant 0 : i32
    return %c0_i32, %c0_i32_0 : i32, i32
  }
  func.func @transform_8(%arg0: i32) -> (i32, i32) {
    %c0_i32 = arith.constant 0 : i32
    %c0_i32_0 = arith.constant 0 : i32
    %c0_i32_1 = arith.constant 0 : i32
    return %c0_i32, %c0_i32_0 : i32, i32
  }
  func.func @transform_9(%arg0: i32) -> (i32, i32) {
    %c0_i32 = arith.constant 0 : i32
    %c0_i32_0 = arith.constant 0 : i32
    %c0_i32_1 = arith.constant 0 : i32
    return %c0_i32, %c0_i32_0 : i32, i32
  }
  func.func @transform_10(%arg0: i32) -> (i32, i32) {
    %c0_i32 = arith.constant 0 : i32
    %c0_i32_0 = arith.constant 0 : i32
    %c0_i32_1 = arith.constant 0 : i32
    return %c0_i32, %c0_i32_0 : i32, i32
  }
  func.func @transform_11(%arg0: i32) -> (i32, i32, i32) {
    %c0_i32 = arith.constant 0 : i32
    %c0_i32_0 = arith.constant 0 : i32
    %c0_i32_1 = arith.constant 0 : i32
    return %arg0, %c0_i32, %c0_i32_0 : i32, i32, i32
  }
}

</mosaic_0001>

<bundles_post_ra>
// kernel: tpu_custom_call.1
= control target key start
LH: loop header
LB: loop body
LE: loop exit
PB: predicated region body
PF: predicated region fallthrough
CT: control target
= control target key end

     0   :  { %s1834_s0 = inlined_call_operand.hbm [shape: bf16[2,16,32], index: 0, kind: input, shape index: {}]   ;;  %s1835_s1 = inlined_call_operand.hbm [shape: bf16[3,32,32], index: 1, kind: input, shape index: {}]   ;;  %s1836_s2 = inlined_call_operand.vmem [shape: f32[1,32], index: 2, kind: input, shape index: {}]   ;;  %s1837_s3 = inlined_call_operand.vmem [shape: f32[1,32], index: 3, kind: input, shape index: {}]   ;;  %s1838_s4 = inlined_call_operand.vmem [shape: f32[1,32], index: 4, kind: input, shape index: {}]   ;;  %s1839_s5 = inlined_call_operand.hbm [shape: bf16[3,32,32], index: 5, kind: input, shape index: {}]   ;;  %s1840_s6 = inlined_call_operand.vmem [shape: f32[1,32], index: 6, kind: input, shape index: {}]   ;;  %s1841_s7 = inlined_call_operand.vmem [shape: f32[1,32], index: 7, kind: input, shape index: {}]   ;;  %s1842_s8 = inlined_call_operand.vmem [shape: f32[1,32], index: 8, kind: input, shape index: {}]   ;;  %s1843_s9 = inlined_call_operand.vmem [shape: f32[1,32], index: 9, kind: input, shape index: {}]   ;;  %s1844_s10 = inlined_call_operand.<no memory space> [shape: f32[1,1], index: 10, kind: input, shape index: {}]   ;;  %s1845_s11 = inlined_call_operand.hbm [shape: f32[2,1,16], index: 11, kind: output, shape index: {}]  }
   0x1   :  { %1853 = sst [smem:[#allocation15_spill]] %s1835_s1  ;;  %v16_v0 = vstv %s1844_s10 }
   0x2   :  { %1854 = sst [smem:[#allocation16_spill]] %s1839_s5  ;;  %17 = vst [vmem:[#allocation2] sm:$0x1] %v16_v0 }
   0x3   :  { %18 = vsyncpa [#allocation4], 0 }
   0x4   :  { %20 = vsyncpa [#allocation4 + $0x1], 0 }
   0x5   :  { %21 = vsyncpa [#allocation7], 0 }
   0x6   :  { %22 = vsyncpa [#allocation5], 0 }
   0x7   :  { %24 = vsyncpa [#allocation5 + $0x1], 0  ;;  %s1555_s19 = smov 0   ;;  %s1557_s20 = smov 0  }
   0x8   :  { %s1559_s21 = smov 0   ;;  %s1561_s22 = smov 0  }
   0x9 LB: > { %1855 = sst [smem:[#allocation13_spill]] %s1477_s21  ;;  %s1576_s10 = sadd.s32 4294967295, %s1481_s22   ;;  %s1481_s22 = sphi %s1561_s22, %s1878_s22   ;;  %s1477_s21 = sphi %s1559_s21, %s1875_s21   ;;  %s1473_s20 = sphi %s1557_s20, %s1877_s20   ;;  %s1469_s19 = sphi %s1555_s19, %s1876_s19  }
   0xa   : > { %s1130_s23 = sadd.s32 4294967294, %s1481_s22   ;;  %p50_p0 = scmp.ne.s32.totalorder %s1473_s20, %s1469_s19 }
   0xb   : > { %p1848_p1 = scmp.eq.s32.totalorder %s1576_s10, 0  ;;  %p284_p2 = scmp.eq.s32.totalorder %s1576_s10, 1 }
   0xc   : > { %p290_p3 = scmp.eq.s32.totalorder %s1130_s23, 1  ;;  %p1131_p5 = scmp.ge.s32.totalorder %s1481_s22, 1 }
   0xd   : > { %p1585_p4 = por %p1848_p1, %p50_p0  ;;  %p297_p7 = scmp.lt.s32.totalorder %s1481_s22, 3 }
   0xe   : > { %p1590_p6 = por %p290_p3, %p50_p0  ;;  %s1483_s27 = smov [#allocation6]  }
   0xf   : > { %s1856_s24 = scalar_select %p1585_p4, 1, 0 }
  0x10   : > { %s1857_s25 = scalar_select %p1590_p6, 1, 0 }
  0x11   : > { %p1595_p8 = pnand %p1131_p5, %p297_p7  ;;  %s309_s28 = sshll.u32 %s1483_s27, 4  ;;  %s310_s28 = int_to_ptr.vmem [resolvable:$true] %s309_s28 }
  0x12   : > { %s1484_s30 = smov [#allocation8]   ;;  %s1344_s13 = scalar_lea.vmem %s310_s28, 768 }
  0x13   : > { %s1858_s26 = scalar_select %p1595_p8, 1, 0 }
  0x14   : > { %p1250_p9 = pneg %p1595_p8  ;;  %s331_s12 = sshll.u32 %s1484_s30, 4  ;;  %s332_s12 = int_to_ptr.vmem [resolvable:$true] %s331_s12 }
  0x15   : > { %p1345_p13 = scmp.ne.s32.totalorder %s310_s28, %s1344_s13  ;;  %p1352_p5 = scmp.lt.s32.totalorder %s310_s28, %s310_s28 }
  0x16   : > { %p1604_p11 = pnand %p1250_p9, %p1848_p1  ;;  %p1353_p7 = scmp.lt.s32.totalorder %s1344_s13, %s1344_s13 }
  0x18   : > { %p1335_p12 = pneg %p1604_p11  ;;  %p1354_p10 = por %p1353_p7, %p1352_p5 }
  0x1a   : > { %p1347_p0 = pnand %p1345_p13, %p1335_p12 }
  0x1c   : > { %p1348_p3 = pneg %p1347_p0 }
  0x1e   : > { %p1355_p9 = pnand %p1354_p10, %p1348_p3 }
  0x20   : > { %1358 = shalt.err (!%p1355_p9)
}
  0x21   : > { %s1846_s14 = smov 64   ;;  %s1847_s15 = smov 4  }
  0x22   : > { %s1860_s1 = sld [smem:[#allocation15_spill]]  ;;  %s1370_s18 = scalar_lea.vmem %s332_s12, 768 }
  0x23   : > { %p1371_p13 = scmp.ne.s32.totalorder %s332_s12, %s1370_s18  ;;  %p1378_p10 = scmp.lt.s32.totalorder %s332_s12, %s332_s12 }
  0x24   : > { %p1379_p3 = scmp.lt.s32.totalorder %s1370_s18, %s1370_s18 }
  0x25   : > { %p1373_p0 = pnand %p1371_p13, %p1335_p12 }
  0x26   : > { %p1380_p7 = por %p1379_p3, %p1378_p10 }
  0x27   : > { %p1374_p5 = pneg %p1373_p0 }
  0x28   : > { %1253 = dma.hbm_to_vmem [thread:$0]  (!%p1604_p11), %s1860_s1, 768, %s310_s28, [#allocation7], %s1846_s14, %s1846_s14, %s1847_s15  }
  0x29   : > { %p1381_p9 = pnand %p1380_p7, %p1374_p5 }
  0x2b   : > { %1384 = shalt.err (!%p1381_p9)
}
  0x2c   : > { %s1861_s5 = sld [smem:[#allocation16_spill]]  ;;  %s1633_s28 = sadd.s32 1, %s1481_s22  }
  0x2d   : > { %s37_s29 = sadd.s32 1, %s1477_s21  ;;  %s34_s30 = ssub.s32 %s1481_s22, %s1633_s28 }
  0x2e   : > { %p44_p12 = scmp.ne.s32.totalorder %s1477_s21, %s1473_s20  ;;  %p35_p13 = scmp.eq.s32.totalorder %s34_s30, 0 }
  0x2f   : > { %p45_p0 = scmp.eq.s32.totalorder %s1481_s22, 0  ;;  %p1267_p10 = scmp.lt.s32.totalorder %s1481_s22, 2 }
  0x30   : > { %p1643_p5 = por %p284_p2, %p44_p12  ;;  %s360_s17 = sand.u32 1, %s1477_s21  }
  0x31   : > { %s1649_s16 = scalar_select %p35_p13, %s1477_s21, %s37_s29  }
  0x32   : > { %1256 = dma.hbm_to_vmem [thread:$0]  (!%p1604_p11), %s1861_s5, 768, %s332_s12, [#allocation7], %s1846_s14, %s1846_s14, %s1847_s15  }
  0x33   : > { %s1862_s13 = scalar_select %p1643_p5, 1, 0 }
  0x34   : > { %1863 = sst [smem:[#allocation14_spill]] %s1649_s16  ;;  %p46_p3 = por %p45_p0, %p44_p12 }
  0x35   : > { %s1135_s18 = sshll.u32 %s360_s17, 3  ;;  %s1171_s12 = sshll.u32 %s1481_s22, 7 }
  0x36   : > { %s1656_s14 = scalar_lea.hbm %s1834_s0, %s1171_s12  ;;  %s364_s30 = scalar_lea.vmem [#allocation3], %s1135_s18 }
  0x37   : > { %s371_s15 = sshll.u32 %s364_s30, 4  ;;  %p1660_p2 = pnand %p1267_p10, %p46_p3  ;;  %s1658_s15 = int_to_ptr.vmem [resolvable:$true] %s371_s15 }
  0x38   : > { %s1664_s29 = scalar_lea.sflag [#allocation4], %s360_s17  ;;  %s1385_s5 = scalar_lea.hbm %s1656_s14, 128 }
  0x39   : > { %p1386_p11 = scmp.ne.s32.totalorder %s1656_s14, %s1385_s5  ;;  %p1387_p7 = pneg %p1660_p2 }
  0x3a   : > { %s1390_s18 = scalar_lea.hbm %s1834_s0, 256  ;;  %p1391_p13 = scmp.lt.s32.totalorder %s1656_s14, %s1834_s0 }
  0x3b   : > { %p1388_p9 = pnand %p1387_p7, %p1386_p11  ;;  %p1392_p0 = scmp.lt.s32.totalorder %s1390_s18, %s1385_s5 }
  0x3d   : > { %p1389_p12 = pneg %p1388_p9  ;;  %p1393_p10 = por %p1392_p0, %p1391_p13 }
  0x3f   : > { %p1394_p3 = pnand %p1393_p10, %p1389_p12 }
  0x41   : > { %1397 = shalt.err (!%p1394_p3)
}
  0x42   : > { %s1398_s17 = scalar_lea.vmem %s1658_s15, 128  ;;  %s1487_s16 = smov [#allocation3]  }
  0x43   : > { %p1399_p1 = scmp.ne.s32.totalorder %s1658_s15, %s1398_s17  ;;  %s1403_s21 = sshll.u32 %s1487_s16, 4  ;;  %s1404_s21 = int_to_ptr.vmem [resolvable:$false] %s1403_s21 }
  0x44   : > { %s1405_s12 = scalar_lea.vmem %s1404_s21, 256  ;;  %p1406_p9 = scmp.lt.s32.totalorder %s1658_s15, %s1404_s21 }
  0x45   : > { %p1401_p6 = pnand %p1399_p1, %p1387_p7  ;;  %p1407_p5 = scmp.lt.s32.totalorder %s1405_s12, %s1398_s17 }
  0x47   : > { %p1402_p11 = pneg %p1401_p6  ;;  %p1408_p4 = por %p1407_p5, %p1406_p9 }
  0x49   : > { %p1409_p8 = pnand %p1408_p4, %p1402_p11 }
  0x4b   : > { %1412 = shalt.err (!%p1409_p8)
}
  0x4c   : > { %s1865_s5 = smov 4   ;;  %s1866_s23 = smov 64  }
  0x4d   : > { %1260 = dma.hbm_to_vmem [thread:$0]  (!%p1660_p2), %s1656_s14, 128, %s1658_s15, %s1664_s29, %s1866_s23, %s1866_s23, %s1865_s5  }
  0x4e   : > { %p1867_p1 = scmp.ne.s32.totalorder %s1858_s26, 0 }
  0x4f   : > { %s1691_s16 = sand.u32 (!%p1867_p1), 1, %s1473_s20   ;;  %p1868_p4 = scmp.ne.s32.totalorder (!%p1867_p1), %s1856_s24, 0 }
  0x50   : > { %383 = sbr.rel (%p1867_p1) target bundleno = 1304 (0x518), region = 64  ;;  %s1139_s21 = sshll.u32 (!%p1867_p1), %s1691_s16, 3 }
  0x51   : > { %s386_s18 = scalar_lea.sflag (!%p1867_p1), [#allocation4], %s1691_s16  ;;  %s389_s27 = scalar_lea.vmem (!%p1867_p1), [#allocation3], %s1139_s21 }
  0x55   : > { %1456 = dma.done.wait (%p1868_p4), %s386_s18, 128  }
  0x56   : > { %1458 = vsyncadd (%p1868_p4), %s386_s18, 4294967168  ;;  %p1869_p6 = scmp.eq.s32.totalorder %s1576_s10, 0 }
  0x58   : > { %1460 = dma.done.wait (%p1869_p6), [#allocation7], 1536   ;;  %p1870_p8 = pmov %p1869_p6 }
  0x59   : > { %v1488_v1 = vmov 0.0   ;;  %vm1489_vm0 = vmmov 0   ;;  %v440_v2 = vlaneseq  ;;  %v1311_v3 = vld [vmem:[#allocation6 + $0x18] sm:$0xff]   ;;  %v1312_v5 = vld [vmem:[#allocation6 + $0x8] sm:$0xff]   ;;  %vm505_vm1 = vcmask 261120   ;;  %v1313_v6 = vld [vmem:[#allocation6 + $0x10] sm:$0xff]  }
  0x5a   : > { %1462 = vsyncadd (%p1870_p8), [#allocation7], 4294965760  ;;  %1190 = vmatprep.subr.bf16.mxu0 %v1488_v1  ;;  %1198 = vmatprep.subr.bf16.mxu1 %v1488_v1  ;;  %v1314_v8 = vld [vmem:[#allocation6] sm:$0xff]   ;;  %vm452_vm2 = vcmask 1040384   ;;  %v436_v9 = vld [vmem:[%s389_s27] sm:$0xff]   ;;  %vm464_vm3 = vcmask 1046528  }
  0x5b   : > { %1194 = vmatprep.mubr.msk.bf16.mxu0 %vm1489_vm0, %v1488_v1  ;;  %1202 = vmatprep.mubr.msk.bf16.mxu1 %vm1489_vm0, %v1488_v1  ;;  %v1710_v4 = vshrl.u32 %v440_v2, 7  ;;  %v438_v10 = vunpack.c.l.bf16 %v436_v9  ;;  %v439_v11 = vunpack.c.h.bf16 %v436_v9  ;;  %v1316_v12 = vld [vmem:[#allocation6 + $0x28] sm:$0xff]   ;;  %v1317_v17 = vld [vmem:[#allocation6 + $0x20] sm:$0xff]   ;;  %v1320_v60 = vld [vmem:[#allocation8 + $0x8] sm:$0xff]   ;;  %s1168_s1 = sshll.u32 %s1576_s10, 4  ;;  %s434_s24 = scalar_lea.vmem [#allocation9], %s1691_s16 }
  0x5c   : > { %1191 = vmatpush3.bf16.msra.mxu0 %v1311_v3  ;;  %1199 = vmatpush3.bf16.msra.mxu1 %v1312_v5  ;;  %v1152_v35 = vld [vmem:[%s1836_s2] ss:$0 sm:$0xff]  ;;  %v1319_v61 = vld [vmem:[#allocation8 + $0x10] sm:$0xff]   ;;  %v1321_v62 = vld [vmem:[#allocation8] sm:$0xff]   ;;  %s1045_s26 = sshll.u32 %s434_s24, 4  ;;  %vm1027_vm6 = vcmask 130112   ;;  %s1797_s29 = scalar_lea.hbm %s1845_s11, %s1168_s1  ;;  %s1046_s26 = int_to_ptr.vmem [resolvable:$true] %s1045_s26 }
  0x5d   : > { %v1713_v7 = vadd.s32 8, %v1710_v4  ;;  %1192 = vmatprep.subr.bf16.mxu0 %v1488_v1  ;;  %1200 = vmatprep.subr.bf16.mxu1 %v1488_v1  ;;  %vm443_vm4 = vcmp.eq.s32.totalorder %v1710_v4, 0  ;;  %v449_v13 = vrot.slane %v439_v11, 7  ;;  %v453_v14 = vrot.slane %v438_v10, 7  ;;  %v1318_v59 = vld [vmem:[#allocation8 + $0x18] sm:$0xff]   ;;  %s1033_s30 = scalar_lea.sflag [#allocation5], %s1691_s16 }
  0x5e   : > { %v465_v15 = vrot.slane %v438_v10, 1  ;;  %v466_v16 = vrot.slane %v439_v11, 1  ;;  %v1153_v10 = vld [vmem:[%s1837_s3] ss:$0 sm:$0xff]  ;;  %vm1030_vm7 = vcmask 122880   ;;  %s1413_s17 = scalar_lea.vmem %s1046_s26, 16 }
  0x5f   : > { %vm446_vm5 = vcmp.eq.s32.totalorder %v1713_v7, 15  ;;  %v454_v18 = vsel %vm452_vm2, %v453_v14, %v449_v13  ;;  %v457_v19 = vsel %vm452_vm2, %v449_v13, %v453_v14  ;;  %v1154_v13 = vld [vmem:[%s1838_s4] ss:$0 sm:$0xff]  ;;  %p1414_p5 = scmp.ne.s32.totalorder %s1046_s26, %s1413_s17  ;;  %p1871_p2 = scmp.ne.s32.totalorder %s1862_s13, 0 }
  0x60   : > { %1193 = vmatpush3.bf16.msra.mxu0 %v1313_v6  ;;  %1201 = vmatpush3.bf16.msra.mxu1 %v1314_v8  ;;  %v471_v20 = vsel %vm464_vm3, %v466_v16, %v465_v15  ;;  %v462_v21 = vsel %vm443_vm4, 0.0, %v457_v19  ;;  %v467_v22 = vsel %vm464_vm3, %v465_v15, %v466_v16  ;;  %v1322_v19 = vld [vmem:[#allocation8 + $0x28] sm:$0xff]   ;;  %s1491_s10 = smov [#allocation9]  }
  0x61   : > { %1206 = vmatprep.subr.bf16.mxu0 %v1488_v1  ;;  %1214 = vmatprep.subr.bf16.mxu1 %v1488_v1  ;;  %v477_v23 = vsel %vm446_vm5, 0.0, %v471_v20  ;;  %v478_v24 = vpack.c.bf16 %v454_v18, %v462_v21  ;;  %p1415_p7 = pnand %p1414_p5, %p1871_p2  ;;  %s1417_s12 = sshll.u32 %s1491_s10, 4  ;;  %s1418_s12 = int_to_ptr.vmem [resolvable:$false] %s1417_s12 }
  0x62   : > { %v606_v25 = vpack.c.bf16 %v477_v23, %v467_v22  ;;  %s1419_s5 = scalar_lea.vmem %s1418_s12, 32  ;;  %p1420_p13 = scmp.lt.s32.totalorder %s1046_s26, %s1418_s12 }
  0x63   : > { %1195 = vmatmul.mubr.msk.bf16.vlgmr.msra.gmra.mxu0 %vm505_vm1, %v436_v9  ;;  %1203 = vmatmul.mubr.msk.bf16.vlgmr.msra.gmra.mxu1 %vm505_vm1, %v478_v24  ;;  %p1416_p12 = pneg %p1415_p7  ;;  %p1421_p0 = scmp.lt.s32.totalorder %s1419_s5, %s1413_s17 }
  0x64   : > { %1207 = vmatpush3.bf16.msra.mxu0 %v1316_v12  ;;  %1210 = vmatprep.mubr.msk.bf16.mxu0 %vm1489_vm0, %v1488_v1 }
  0x65   : > { %1208 = vmatprep.subr.bf16.mxu0 %v1488_v1  ;;  %1218 = vmatprep.mubr.msk.bf16.mxu1 %vm1489_vm0, %v1488_v1  ;;  %p1422_p10 = por %p1421_p0, %p1420_p13 }
  0x66   : > { %1215 = vmatpush3.bf16.msra.mxu1 %v1318_v59 }
  0x67   : > { %1216 = vmatprep.subr.bf16.mxu1 %v1488_v1  ;;  %p1423_p3 = pnand %p1422_p10, %p1416_p12 }
  0x68   : > { %1209 = vmatpush3.bf16.msra.mxu0 %v1317_v17 }
  0x69   : > { %1222 = vmatprep.subr.bf16.mxu0 %v1488_v1 }
  0x6a   : > { %1217 = vmatpush3.bf16.msra.mxu1 %v1319_v61 }
  0x6b   : > { %1211 = vmatmul.mubr.msk.bf16.vlgmr.msra.gmra.mxu0 %vm505_vm1, %v606_v25  ;;  %1230 = vmatprep.subr.bf16.mxu1 %v1488_v1 }
  0x6c   : > { %1226 = vmatprep.mubr.msk.bf16.mxu0 %vm1489_vm0, %v1488_v1  ;;  %1223 = vmatpush3.bf16.msra.mxu0 %v1320_v60 }
  0x6d   : > { %1224 = vmatprep.subr.bf16.mxu0 %v1488_v1 }
  0x70   : > { %1225 = vmatpush3.bf16.msra.mxu0 %v1321_v62 }
 0x123   : > { %v543_v26 = vpop.f32.mrf.mxu0  ;;  %v599_v28 = vpop.f32.mrf.mxu1 }
 0x124   : > { %v600_v32 = vadd.f32 %v599_v28, %v543_v26 }
 0x125   : > { %v1196_v27 = vpop.f32.mrf.mxu0  ;;  %v1204_v30 = vpop.f32.mrf.mxu1 }
 0x127   : > { %v546_v29 = vpop.f32.mrf.mxu0  ;;  %v602_v33 = vpop.f32.mrf.mxu1 }
 0x128   : > { %v603_v39 = vadd.f32 %v602_v33, %v546_v29  ;;  %v1323_v29 = vld [vmem:[#allocation8 + $0x20] sm:$0xff]  }
 0x129   : > { %v1197_v31 = vpop.f32.mrf.mxu0  ;;  %v1205_v37 = vpop.f32.mrf.mxu1 }
 0x12b   : > { %v661_v34 = vpop.f32.mrf.mxu0 }
 0x12c   : > { %v668_v36 = vadd.f32 %v661_v34, %v600_v32 }
 0x12d   : > { %v1212_v38 = vpop.f32.mrf.mxu0 }
 0x12e   : > { %v676_v40 = vadd.f32 %v1152_v35, %v668_v36 }
 0x12f   : > { %v664_v41 = vpop.f32.mrf.mxu0 }
 0x130   : > { %v669_v42 = vadd.f32 %v664_v41, %v603_v39  ;;  %v678_v43 = vmax.f32 %v676_v40, 0.0 }
 0x131   : > { %v1213_v44 = vpop.f32.mrf.mxu0 }
 0x132   : > { %v677_v45 = vadd.f32 %v1152_v35, %v669_v42  ;;  %v682_v46 = vsel %vm505_vm1, %v678_v43, 0.0 }
 0x133   : > { %683 = vadd.xlane.f32.xlu0 %v682_v46 }
 0x134   : > { %v679_v47 = vmax.f32 %v677_v45, 0.0 }
 0x136   : > { %v685_v48 = vsel %vm505_vm1, %v679_v47, 0.0 }
 0x137   : > { %686 = vadd.xlane.f32.xlu0 %v685_v48 }
 0x1bc   : > { %v684_v49 = vpop.xlane.xlu0 %683 }
 0x1bd   : > { %v689_v50 = vmul.f32 0.03125, %v684_v49 }
 0x1bf   : > { %v691_v51 = vsub.f32 %v678_v43, %v689_v50 }
 0x1c0   : > { %v687_v52 = vpop.xlane.xlu0 %686 }
 0x1c1   : > { %v690_v53 = vmul.f32 0.03125, %v687_v52  ;;  %v693_v54 = vmul.f32 %v691_v51, %v691_v51 }
 0x1c3   : > { %v692_v55 = vsub.f32 %v679_v47, %v690_v53  ;;  %v695_v56 = vsel %vm505_vm1, %v693_v54, 0.0 }
 0x1c4   : > { %696 = vadd.xlane.f32.xlu1 %v695_v56 }
 0x1c5   : > { %v694_v57 = vmul.f32 %v692_v55, %v692_v55 }
 0x1c7   : > { %v698_v58 = vsel %vm505_vm1, %v694_v57, 0.0 }
 0x1c8   : > { %699 = vadd.xlane.f32.xlu1 %v698_v58 }
 0x24d   : > { %v697_v63 = vpop.xlane.xlu1 %696 }
 0x24e   : > { %v701_v0 = vmul.f32 0.03125, %v697_v63 }
 0x250   : > { %v703_v3 = vadd.f32 1e-05, %v701_v0 }
 0x251   : > { %v700_v5 = vpop.xlane.xlu1 %699 }
 0x252   : > { %1325 = vrsqrt.f32 %v703_v3  ;;  %v702_v6 = vmul.f32 0.03125, %v700_v5  ;;  %v1490_v3 = vmov 0  }
 0x253   : > { %1310 = vset.pattern.permute.xlu0 %v1490_v3 }
 0x254   : > { %v704_v8 = vadd.f32 1e-05, %v702_v6 }
 0x256   : > { %1327 = vrsqrt.f32 %v704_v8 }
 0x25f   : > { %v1326_v9 = vpop.eup %1325 }
 0x260   : > { %v707_v11 = vmul.f32 %v1326_v9, %v691_v51 }
 0x262   : > { %v715_v12 = vmul.f32 %v1153_v10, %v707_v11 }
 0x263   : > { %v1328_v14 = vpop.eup %1327 }
 0x264   : > { %v708_v15 = vmul.f32 %v1328_v14, %v692_v55  ;;  %v723_v16 = vadd.f32 %v1154_v13, %v715_v12 }
 0x266   : > { %v716_v17 = vmul.f32 %v1153_v10, %v708_v15  ;;  %v730_v20 = vrot.slane %v723_v16, 7  ;;  %v737_v23 = vrot.slane %v723_v16, 1  ;;  %v1166_v15 = vld [vmem:[%s1842_s8] ss:$0 sm:$0xff] }
 0x268   : > { %v724_v18 = vadd.f32 %v1154_v13, %v716_v17  ;;  %v1165_v13 = vld [vmem:[%s1841_s7] ss:$0 sm:$0xff] }
 0x26a   : > { %v751_v21 = vpack.c.bf16 %v724_v18, %v723_v16  ;;  %v727_v22 = vrot.slane %v724_v18, 7  ;;  %v738_v24 = vrot.slane %v724_v18, 1  ;;  %v1167_v18 = vld [vmem:[%s1843_s9] ss:$0 sm:$0xff] }
 0x26c   : > { %1219 = vmatmul.mubr.msk.bf16.vlgmr.msra.gmra.mxu1 %vm505_vm1, %v751_v21  ;;  %v731_v25 = vsel %vm452_vm2, %v730_v20, %v727_v22  ;;  %v734_v26 = vsel %vm452_vm2, %v727_v22, %v730_v20  ;;  %v743_v27 = vsel %vm464_vm3, %v738_v24, %v737_v23  ;;  %v739_v31 = vsel %vm464_vm3, %v737_v23, %v738_v24 }
 0x26d   : > { %1231 = vmatpush3.bf16.msra.mxu1 %v1322_v19  ;;  %v735_v28 = vsel %vm443_vm4, 0.0, %v734_v26  ;;  %1234 = vmatprep.mubr.msk.bf16.mxu1 %vm1489_vm0, %v1488_v1  ;;  %v745_v32 = vsel %vm446_vm5, 0.0, %v743_v27  ;;  %v1002_v27 = vld [vmem:[#allocation2] sm:$0x1] }
 0x26e   : > { %v746_v30 = vpack.c.bf16 %v731_v25, %v735_v28  ;;  %1232 = vmatprep.subr.bf16.mxu1 %v1488_v1  ;;  %v869_v33 = vpack.c.bf16 %v745_v32, %v739_v31  ;;  %v1164_v1 = vld [vmem:[%s1840_s6] ss:$0 sm:$0xff]  ;;  %v1017_v28 = vand.u32 127, %v440_v2 }
 0x270   : > { %1227 = vmatmul.mubr.msk.bf16.vlgmr.msra.gmra.mxu0 %vm505_vm1, %v746_v30  ;;  %v1010_v30 = vsub.s32 0, %v1710_v4  ;;  %v1022_v31 = vadd.s32 4294967288, %v1017_v28 }
 0x271   : > { %1233 = vmatpush3.bf16.msra.mxu1 %v1323_v29 }
 0x274   : > { %1235 = vmatmul.mubr.msk.bf16.vlgmr.msra.gmra.mxu1 %vm505_vm1, %v869_v33  ;;  %v1020_v33 = vsub.s32 %v1017_v28, %v1710_v4 }
 0x32c   : > { %v806_v34 = vpop.f32.mrf.mxu1 }
 0x32e   : > { %v1220_v35 = vpop.f32.mrf.mxu1 }
 0x330   : > { %v809_v36 = vpop.f32.mrf.mxu1  ;;  %v862_v37 = vpop.f32.mrf.mxu0 }
 0x331   : > { %v863_v40 = vadd.f32 %v862_v37, %v806_v34  ;;  %v1025_v34 = vsub.s32 %v1022_v31, %v1710_v4 }
 0x332   : > { %v1221_v38 = vpop.f32.mrf.mxu1  ;;  %v1228_v39 = vpop.f32.mrf.mxu0 }
 0x334   : > { %v865_v41 = vpop.f32.mrf.mxu0  ;;  %v924_v7 = vpop.f32.mrf.mxu1 }
 0x335   : > { %v931_v42 = vadd.f32 %v924_v7, %v863_v40  ;;  %v866_v45 = vadd.f32 %v865_v41, %v809_v36 }
 0x336   : > { %v1229_v43 = vpop.f32.mrf.mxu0  ;;  %v1236_v44 = vpop.f32.mrf.mxu1 }
 0x337   : > { %v939_v46 = vadd.f32 %v1164_v1, %v931_v42 }
 0x338   : > { %v927_v47 = vpop.f32.mrf.mxu1 }
 0x339   : > { %v932_v48 = vadd.f32 %v927_v47, %v866_v45  ;;  %v941_v49 = vmax.f32 %v939_v46, 0.0 }
 0x33a   : > { %v1237_v50 = vpop.f32.mrf.mxu1 }
 0x33b   : > { %v940_v51 = vadd.f32 %v1164_v1, %v932_v48  ;;  %v945_v52 = vsel %vm505_vm1, %v941_v49, 0.0 }
 0x33c   : > { %946 = vadd.xlane.f32.xlu0 %v945_v52 }
 0x33d   : > { %v942_v53 = vmax.f32 %v940_v51, 0.0 }
 0x33f   : > { %v948_v54 = vsel %vm505_vm1, %v942_v53, 0.0 }
 0x340   : > { %949 = vadd.xlane.f32.xlu1 %v948_v54 }
 0x3c5   : > { %v947_v55 = vpop.xlane.xlu0 %946 }
 0x3c6   : > { %v951_v56 = vmul.f32 0.03125, %v947_v55 }
 0x3c8   : > { %v953_v57 = vsub.f32 %v941_v49, %v951_v56 }
 0x3c9   : > { %v950_v58 = vpop.xlane.xlu1 %949 }
 0x3ca   : > { %v952_v59 = vmul.f32 0.03125, %v950_v58  ;;  %v955_v60 = vmul.f32 %v953_v57, %v953_v57 }
 0x3cc   : > { %v954_v61 = vsub.f32 %v942_v53, %v952_v59  ;;  %v957_v62 = vsel %vm505_vm1, %v955_v60, 0.0 }
 0x3cd   : > { %958 = vadd.xlane.f32.xlu0 %v957_v62 }
 0x3ce   : > { %v956_v63 = vmul.f32 %v954_v61, %v954_v61 }
 0x3d0   : > { %v960_v0 = vsel %vm505_vm1, %v956_v63, 0.0 }
 0x3d1   : > { %961 = vadd.xlane.f32.xlu1 %v960_v0 }
 0x456   : > { %v959_v5 = vpop.xlane.xlu0 %958 }
 0x457   : > { %v963_v6 = vmul.f32 0.03125, %v959_v5 }
 0x459   : > { %v965_v8 = vadd.f32 1e-05, %v963_v6 }
 0x45a   : > { %v962_v9 = vpop.xlane.xlu1 %961 }
 0x45b   : > { %1329 = vrsqrt.f32 %v965_v8  ;;  %v964_v10 = vmul.f32 0.03125, %v962_v9 }
 0x45d   : > { %v966_v11 = vadd.f32 1e-05, %v964_v10 }
 0x45f   : > { %1331 = vrsqrt.f32 %v966_v11 }
 0x468   : > { %v1330_v12 = vpop.eup %1329 }
 0x469   : > { %v969_v14 = vmul.f32 %v1330_v12, %v953_v57 }
 0x46b   : > { %v977_v16 = vmul.f32 %v1165_v13, %v969_v14 }
 0x46c   : > { %v1332_v17 = vpop.eup %1331 }
 0x46d   : > { %v985_v19 = vadd.f32 %v1166_v15, %v977_v16  ;;  %v970_v20 = vmul.f32 %v1332_v17, %v954_v61 }
 0x46f   : > { %v994_v21 = vmul.f32 %v1167_v18, %v985_v19  ;;  %v978_v22 = vmul.f32 %v1165_v13, %v970_v20 }
 0x471   : > { %v996_v23 = vsel %vm505_vm1, %v994_v21, 0.0  ;;  %v986_v24 = vadd.f32 %v1166_v15, %v978_v22 }
 0x472   : > { %997 = vadd.xlane.f32.xlu0 %v996_v23 }
 0x473   : > { %v995_v25 = vmul.f32 %v1167_v18, %v986_v24 }
 0x475   : > { %v999_v26 = vsel %vm505_vm1, %v995_v25, 0.0 }
 0x476   : > { %1000 = vadd.xlane.f32.xlu1 %v999_v26 }
 0x488   : > { %1005 = vperm.xlu0 %1310, %v1002_v27  }
 0x4fb   : > { %v998_v29 = vpop.xlane.xlu0 %997 }
 0x4ff   : > { %v1001_v36 = vpop.xlane.xlu1 %1000 }
 0x503   : > { %v1006_v32 = vpop.permute.xlu0 %1005 }
 0x504   : > { %v1011_v35 = vrot.slane %v1006_v32, %v1010_v30 }
 0x506   : > { %v1012_v37 = vadd.f32 %v1011_v35, %v998_v29  ;;  %v1013_v38 = vadd.f32 %v1011_v35, %v1001_v36 }
 0x508   : > { %v1021_v2 = vrot.slane %v1012_v37, %v1020_v33  ;;  %v1026_v39 = vrot.slane %v1013_v38, %v1025_v34 }
 0x50a   : > { %v1028_v4 = vsel %vm1027_vm6, %v1026_v39, %v1021_v2 }
 0x50b   : > { %1031 = vst.msk [vmem:[%s434_s24] sm:$0x1] %vm1030_vm7, %v1028_v4 }
 0x50c   : > { %1426 = shalt.err (!%p1423_p3)
}
 0x50d   : > { %s1427_s23 = scalar_lea.hbm %s1797_s29, 16  ;;  %s1431_s18 = scalar_lea.hbm %s1845_s11, 32 }
 0x50e   : > { %p1428_p11 = scmp.ne.s32.totalorder %s1797_s29, %s1427_s23  ;;  %p1432_p4 = scmp.lt.s32.totalorder %s1797_s29, %s1845_s11 }
 0x50f   : > { %p1433_p6 = scmp.lt.s32.totalorder %s1431_s18, %s1427_s23 }
 0x510   : > { %p1429_p9 = pnand %p1428_p11, %p1871_p2 }
 0x511   : > { %p1434_p8 = por %p1433_p6, %p1432_p4 }
 0x512   : > { %p1430_p1 = pneg %p1429_p9 }
 0x514   : > { %p1435_p5 = pnand %p1434_p8, %p1430_p1 }
 0x516   : > { %1438 = shalt.err (!%p1435_p5)
}
 0x517   : > { %1248 = dma.vmem_to_hbm [thread:$0]  (%p1871_p2), %s1046_s26, 16, %s1797_s29, %s1033_s30  }
 0x518 PF: > { %s1057_s24 = sand.u32 1, %s1469_s19   ;;  %p1872_p7 = scmp.ne.s32.totalorder %s1857_s25, 0 }
 0x519   : > { %p1873_p12 = scmp.ge.s32.totalorder %s1481_s22, 2  ;;  %s1058_s14 = scalar_lea.sflag [#allocation5], %s1057_s24 }
 0x51b   : > { %p1262_p13 = pnand %p1873_p12, %p1872_p7 }
 0x51d   : > { %p1263_p0 = pneg %p1262_p13 }
 0x51f   : > { %1464 = dma.done.wait (%p1263_p0), %s1058_s14, 16  }
 0x520   : > { %1466 = vsyncadd (%p1263_p0), %s1058_s14, 4294967280  ;;  %s1874_s15 = sld [smem:[#allocation13_spill]]  ;;  %p27_p10 = scmp.ge.s32.totalorder %s1633_s28, 4  }
 0x521   : > { %s1875_s21 = sld [smem:[#allocation14_spill]]  ;;  %s1876_s19 = smov %s1473_s20 }
 0x522   : > { %s1878_s22 = smov %s1633_s28  ;;  %29 = sbr.rel (!%p27_p10) target bundleno = 9 (0x9), region = 121 }
 0x526   : > { %s1877_s20 = smov %s1874_s15 }
 0x527   :  { %1062 = vsyncpa [#allocation4], 1 }
 0x528   :  { %1064 = vsyncpa [#allocation4 + $0x1], 1 }
 0x529   :  { %1065 = vsyncpa [#allocation7], 1 }
 0x52a   :  { %1066 = vsyncpa [#allocation5], 1 }
 0x52b   :  { %1068 = vsyncpa [#allocation5 + $0x1], 1 }

// kernel: tpu_custom_call.1
= control target key start
LH: loop header
LB: loop body
LE: loop exit
PB: predicated region body
PF: predicated region fallthrough
CT: control target
= control target key end

     0   :  { %s1834_s0 = inlined_call_operand.hbm [shape: bf16[2,16,32], index: 0, kind: input, shape index: {}]   ;;  %s1835_s1 = inlined_call_operand.hbm [shape: bf16[3,32,32], index: 1, kind: input, shape index: {}]   ;;  %s1836_s2 = inlined_call_operand.vmem [shape: f32[1,32], index: 2, kind: input, shape index: {}]   ;;  %s1837_s3 = inlined_call_operand.vmem [shape: f32[1,32], index: 3, kind: input, shape index: {}]   ;;  %s1838_s4 = inlined_call_operand.vmem [shape: f32[1,32], index: 4, kind: input, shape index: {}]   ;;  %s1839_s5 = inlined_call_operand.hbm [shape: bf16[3,32,32], index: 5, kind: input, shape index: {}]   ;;  %s1840_s6 = inlined_call_operand.vmem [shape: f32[1,32], index: 6, kind: input, shape index: {}]   ;;  %s1841_s7 = inlined_call_operand.vmem [shape: f32[1,32], index: 7, kind: input, shape index: {}]   ;;  %s1842_s8 = inlined_call_operand.vmem [shape: f32[1,32], index: 8, kind: input, shape index: {}]   ;;  %s1843_s9 = inlined_call_operand.vmem [shape: f32[1,32], index: 9, kind: input, shape index: {}]   ;;  %s1844_s10 = inlined_call_operand.<no memory space> [shape: f32[1,1], index: 10, kind: input, shape index: {}]   ;;  %s1845_s11 = inlined_call_operand.hbm [shape: f32[2,1,16], index: 11, kind: output, shape index: {}]  }
   0x1   :  { %1853 = sst [smem:[#allocation15_spill]] %s1835_s1  ;;  %v16_v0 = vstv %s1844_s10 }
   0x2   :  { %1854 = sst [smem:[#allocation16_spill]] %s1839_s5  ;;  %17 = vst [vmem:[#allocation2] sm:$0x1] %v16_v0 }
   0x3   :  { %18 = vsyncpa [#allocation4], 0 }
   0x4   :  { %20 = vsyncpa [#allocation4 + $0x1], 0 }
   0x5   :  { %21 = vsyncpa [#allocation7], 0 }
   0x6   :  { %22 = vsyncpa [#allocation5], 0 }
   0x7   :  { %24 = vsyncpa [#allocation5 + $0x1], 0  ;;  %s1555_s19 = smov 0   ;;  %s1557_s20 = smov 0  }
   0x8   :  { %s1559_s21 = smov 0   ;;  %s1561_s22 = smov 0  }
   0x9 LB: > { %1855 = sst [smem:[#allocation13_spill]] %s1477_s21  ;;  %s1576_s10 = sadd.s32 4294967295, %s1481_s22   ;;  %s1481_s22 = sphi %s1561_s22, %s1878_s22   ;;  %s1477_s21 = sphi %s1559_s21, %s1875_s21   ;;  %s1473_s20 = sphi %s1557_s20, %s1877_s20   ;;  %s1469_s19 = sphi %s1555_s19, %s1876_s19  }
   0xa   : > { %s1130_s23 = sadd.s32 4294967294, %s1481_s22   ;;  %p50_p0 = scmp.ne.s32.totalorder %s1473_s20, %s1469_s19 }
   0xb   : > { %p1848_p1 = scmp.eq.s32.totalorder %s1576_s10, 0  ;;  %p284_p2 = scmp.eq.s32.totalorder %s1576_s10, 1 }
   0xc   : > { %p290_p3 = scmp.eq.s32.totalorder %s1130_s23, 1  ;;  %p1131_p5 = scmp.ge.s32.totalorder %s1481_s22, 1 }
   0xd   : > { %p1585_p4 = por %p1848_p1, %p50_p0  ;;  %p297_p7 = scmp.lt.s32.totalorder %s1481_s22, 3 }
   0xe   : > { %p1590_p6 = por %p290_p3, %p50_p0  ;;  %s1483_s27 = smov [#allocation6]  }
   0xf   : > { %s1856_s24 = scalar_select %p1585_p4, 1, 0 }
  0x10   : > { %s1857_s25 = scalar_select %p1590_p6, 1, 0 }
  0x11   : > { %p1595_p8 = pnand %p1131_p5, %p297_p7  ;;  %s309_s28 = sshll.u32 %s1483_s27, 4  ;;  %s310_s28 = int_to_ptr.vmem [resolvable:$true] %s309_s28 }
  0x12   : > { %s1484_s30 = smov [#allocation8]   ;;  %s1344_s13 = scalar_lea.vmem %s310_s28, 768 }
  0x13   : > { %s1858_s26 = scalar_select %p1595_p8, 1, 0 }
  0x14   : > { %p1250_p9 = pneg %p1595_p8  ;;  %s331_s12 = sshll.u32 %s1484_s30, 4  ;;  %s332_s12 = int_to_ptr.vmem [resolvable:$true] %s331_s12 }
  0x15   : > { %p1345_p13 = scmp.ne.s32.totalorder %s310_s28, %s1344_s13  ;;  %p1352_p5 = scmp.lt.s32.totalorder %s310_s28, %s310_s28 }
  0x16   : > { %p1604_p11 = pnand %p1250_p9, %p1848_p1  ;;  %p1353_p7 = scmp.lt.s32.totalorder %s1344_s13, %s1344_s13 }
  0x18   : > { %p1335_p12 = pneg %p1604_p11  ;;  %p1354_p10 = por %p1353_p7, %p1352_p5 }
  0x1a   : > { %p1347_p0 = pnand %p1345_p13, %p1335_p12 }
  0x1c   : > { %p1348_p3 = pneg %p1347_p0 }
  0x1e   : > { %p1355_p9 = pnand %p1354_p10, %p1348_p3 }
  0x20   : > { %1358 = shalt.err (!%p1355_p9)
}
  0x21   : > { %s1846_s14 = smov 64   ;;  %s1847_s15 = smov 4  }
  0x22   : > { %s1860_s1 = sld [smem:[#allocation15_spill]]  ;;  %s1370_s18 = scalar_lea.vmem %s332_s12, 768 }
  0x23   : > { %p1371_p13 = scmp.ne.s32.totalorder %s332_s12, %s1370_s18  ;;  %p1378_p10 = scmp.lt.s32.totalorder %s332_s12, %s332_s12 }
  0x24   : > { %p1379_p3 = scmp.lt.s32.totalorder %s1370_s18, %s1370_s18 }
  0x25   : > { %p1373_p0 = pnand %p1371_p13, %p1335_p12 }
  0x26   : > { %p1380_p7 = por %p1379_p3, %p1378_p10 }
  0x27   : > { %p1374_p5 = pneg %p1373_p0 }
  0x28   : > { %1253 = dma.hbm_to_vmem [thread:$0]  (!%p1604_p11), %s1860_s1, 768, %s310_s28, [#allocation7], %s1846_s14, %s1846_s14, %s1847_s15  }
  0x29   : > { %p1381_p9 = pnand %p1380_p7, %p1374_p5 }
  0x2b   : > { %1384 = shalt.err (!%p1381_p9)
}
  0x2c   : > { %s1861_s5 = sld [smem:[#allocation16_spill]]  ;;  %s1633_s28 = sadd.s32 1, %s1481_s22  }
  0x2d   : > { %s37_s29 = sadd.s32 1, %s1477_s21  ;;  %s34_s30 = ssub.s32 %s1481_s22, %s1633_s28 }
  0x2e   : > { %p44_p12 = scmp.ne.s32.totalorder %s1477_s21, %s1473_s20  ;;  %p35_p13 = scmp.eq.s32.totalorder %s34_s30, 0 }
  0x2f   : > { %p45_p0 = scmp.eq.s32.totalorder %s1481_s22, 0  ;;  %p1267_p10 = scmp.lt.s32.totalorder %s1481_s22, 2 }
  0x30   : > { %p1643_p5 = por %p284_p2, %p44_p12  ;;  %s360_s17 = sand.u32 1, %s1477_s21  }
  0x31   : > { %s1649_s16 = scalar_select %p35_p13, %s1477_s21, %s37_s29  }
  0x32   : > { %1256 = dma.hbm_to_vmem [thread:$0]  (!%p1604_p11), %s1861_s5, 768, %s332_s12, [#allocation7], %s1846_s14, %s1846_s14, %s1847_s15  }
  0x33   : > { %s1862_s13 = scalar_select %p1643_p5, 1, 0 }
  0x34   : > { %1863 = sst [smem:[#allocation14_spill]] %s1649_s16  ;;  %p46_p3 = por %p45_p0, %p44_p12 }
  0x35   : > { %s1135_s18 = sshll.u32 %s360_s17, 3  ;;  %s1171_s12 = sshll.u32 %s1481_s22, 7 }
  0x36   : > { %s1656_s14 = scalar_lea.hbm %s1834_s0, %s1171_s12  ;;  %s364_s30 = scalar_lea.vmem [#allocation3], %s1135_s18 }
  0x37   : > { %s371_s15 = sshll.u32 %s364_s30, 4  ;;  %p1660_p2 = pnand %p1267_p10, %p46_p3  ;;  %s1658_s15 = int_to_ptr.vmem [resolvable:$true] %s371_s15 }
  0x38   : > { %s1664_s29 = scalar_lea.sflag [#allocation4], %s360_s17  ;;  %s1385_s5 = scalar_lea.hbm %s1656_s14, 128 }
  0x39   : > { %p1386_p11 = scmp.ne.s32.totalorder %s1656_s14, %s1385_s5  ;;  %p1387_p7 = pneg %p1660_p2 }
  0x3a   : > { %s1390_s18 = scalar_lea.hbm %s1834_s0, 256  ;;  %p1391_p13 = scmp.lt.s32.totalorder %s1656_s14, %s1834_s0 }
  0x3b   : > { %p1388_p9 = pnand %p1387_p7, %p1386_p11  ;;  %p1392_p0 = scmp.lt.s32.totalorder %s1390_s18, %s1385_s5 }
  0x3d   : > { %p1389_p12 = pneg %p1388_p9  ;;  %p1393_p10 = por %p1392_p0, %p1391_p13 }
  0x3f   : > { %p1394_p3 = pnand %p1393_p10, %p1389_p12 }
  0x41   : > { %1397 = shalt.err (!%p1394_p3)
}
  0x42   : > { %s1398_s17 = scalar_lea.vmem %s1658_s15, 128  ;;  %s1487_s16 = smov [#allocation3]  }
  0x43   : > { %p1399_p1 = scmp.ne.s32.totalorder %s1658_s15, %s1398_s17  ;;  %s1403_s21 = sshll.u32 %s1487_s16, 4  ;;  %s1404_s21 = int_to_ptr.vmem [resolvable:$false] %s1403_s21 }
  0x44   : > { %s1405_s12 = scalar_lea.vmem %s1404_s21, 256  ;;  %p1406_p9 = scmp.lt.s32.totalorder %s1658_s15, %s1404_s21 }
  0x45   : > { %p1401_p6 = pnand %p1399_p1, %p1387_p7  ;;  %p1407_p5 = scmp.lt.s32.totalorder %s1405_s12, %s1398_s17 }
  0x47   : > { %p1402_p11 = pneg %p1401_p6  ;;  %p1408_p4 = por %p1407_p5, %p1406_p9 }
  0x49   : > { %p1409_p8 = pnand %p1408_p4, %p1402_p11 }
  0x4b   : > { %1412 = shalt.err (!%p1409_p8)
}
  0x4c   : > { %s1865_s5 = smov 4   ;;  %s1866_s23 = smov 64  }
  0x4d   : > { %1260 = dma.hbm_to_vmem [thread:$0]  (!%p1660_p2), %s1656_s14, 128, %s1658_s15, %s1664_s29, %s1866_s23, %s1866_s23, %s1865_s5  }
  0x4e   : > { %p1867_p1 = scmp.ne.s32.totalorder %s1858_s26, 0 }
  0x4f   : > { %s1691_s16 = sand.u32 (!%p1867_p1), 1, %s1473_s20   ;;  %p1868_p4 = scmp.ne.s32.totalorder (!%p1867_p1), %s1856_s24, 0 }
  0x50   : > { %383 = sbr.rel (%p1867_p1) target bundleno = 1304 (0x518), region = 64  ;;  %s1139_s21 = sshll.u32 (!%p1867_p1), %s1691_s16, 3 }
  0x51   : > { %s386_s18 = scalar_lea.sflag (!%p1867_p1), [#allocation4], %s1691_s16  ;;  %s389_s27 = scalar_lea.vmem (!%p1867_p1), [#allocation3], %s1139_s21 }
  0x55   : > { %1456 = dma.done.wait (%p1868_p4), %s386_s18, 128  }
  0x56   : > { %1458 = vsyncadd (%p1868_p4), %s386_s18, 4294967168  ;;  %p1869_p6 = scmp.eq.s32.totalorder %s1576_s10, 0 }
  0x58   : > { %1460 = dma.done.wait (%p1869_p6), [#allocation7], 1536   ;;  %p1870_p8 = pmov %p1869_p6 }
  0x59   : > { %v1488_v1 = vmov 0.0   ;;  %vm1489_vm0 = vmmov 0   ;;  %v440_v2 = vlaneseq  ;;  %v1311_v3 = vld [vmem:[#allocation6 + $0x18] sm:$0xff]   ;;  %v1312_v5 = vld [vmem:[#allocation6 + $0x8] sm:$0xff]   ;;  %vm505_vm1 = vcmask 261120   ;;  %v1313_v6 = vld [vmem:[#allocation6 + $0x10] sm:$0xff]  }
  0x5a   : > { %1462 = vsyncadd (%p1870_p8), [#allocation7], 4294965760  ;;  %1190 = vmatprep.subr.bf16.mxu0 %v1488_v1  ;;  %1198 = vmatprep.subr.bf16.mxu1 %v1488_v1  ;;  %v1314_v8 = vld [vmem:[#allocation6] sm:$0xff]   ;;  %vm452_vm2 = vcmask 1040384   ;;  %v436_v9 = vld [vmem:[%s389_s27] sm:$0xff]   ;;  %vm464_vm3 = vcmask 1046528  }
  0x5b   : > { %1194 = vmatprep.mubr.msk.bf16.mxu0 %vm1489_vm0, %v1488_v1  ;;  %1202 = vmatprep.mubr.msk.bf16.mxu1 %vm1489_vm0, %v1488_v1  ;;  %v1710_v4 = vshrl.u32 %v440_v2, 7  ;;  %v438_v10 = vunpack.c.l.bf16 %v436_v9  ;;  %v439_v11 = vunpack.c.h.bf16 %v436_v9  ;;  %v1316_v12 = vld [vmem:[#allocation6 + $0x28] sm:$0xff]   ;;  %v1317_v17 = vld [vmem:[#allocation6 + $0x20] sm:$0xff]   ;;  %v1320_v60 = vld [vmem:[#allocation8 + $0x8] sm:$0xff]   ;;  %s1168_s1 = sshll.u32 %s1576_s10, 4  ;;  %s434_s24 = scalar_lea.vmem [#allocation9], %s1691_s16 }
  0x5c   : > { %1191 = vmatpush3.bf16.msra.mxu0 %v1311_v3  ;;  %1199 = vmatpush3.bf16.msra.mxu1 %v1312_v5  ;;  %v1152_v35 = vld [vmem:[%s1836_s2] ss:$0 sm:$0xff]  ;;  %v1319_v61 = vld [vmem:[#allocation8 + $0x10] sm:$0xff]   ;;  %v1321_v62 = vld [vmem:[#allocation8] sm:$0xff]   ;;  %s1045_s26 = sshll.u32 %s434_s24, 4  ;;  %vm1027_vm6 = vcmask 130112   ;;  %s1797_s29 = scalar_lea.hbm %s1845_s11, %s1168_s1  ;;  %s1046_s26 = int_to_ptr.vmem [resolvable:$true] %s1045_s26 }
  0x5d   : > { %v1713_v7 = vadd.s32 8, %v1710_v4  ;;  %1192 = vmatprep.subr.bf16.mxu0 %v1488_v1  ;;  %1200 = vmatprep.subr.bf16.mxu1 %v1488_v1  ;;  %vm443_vm4 = vcmp.eq.s32.totalorder %v1710_v4, 0  ;;  %v449_v13 = vrot.slane %v439_v11, 7  ;;  %v453_v14 = vrot.slane %v438_v10, 7  ;;  %v1318_v59 = vld [vmem:[#allocation8 + $0x18] sm:$0xff]   ;;  %s1033_s30 = scalar_lea.sflag [#allocation5], %s1691_s16 }
  0x5e   : > { %v465_v15 = vrot.slane %v438_v10, 1  ;;  %v466_v16 = vrot.slane %v439_v11, 1  ;;  %v1153_v10 = vld [vmem:[%s1837_s3] ss:$0 sm:$0xff]  ;;  %vm1030_vm7 = vcmask 122880   ;;  %s1413_s17 = scalar_lea.vmem %s1046_s26, 16 }
  0x5f   : > { %vm446_vm5 = vcmp.eq.s32.totalorder %v1713_v7, 15  ;;  %v454_v18 = vsel %vm452_vm2, %v453_v14, %v449_v13  ;;  %v457_v19 = vsel %vm452_vm2, %v449_v13, %v453_v14  ;;  %v1154_v13 = vld [vmem:[%s1838_s4] ss:$0 sm:$0xff]  ;;  %p1414_p5 = scmp.ne.s32.totalorder %s1046_s26, %s1413_s17  ;;  %p1871_p2 = scmp.ne.s32.totalorder %s1862_s13, 0 }
  0x60   : > { %1193 = vmatpush3.bf16.msra.mxu0 %v1313_v6  ;;  %1201 = vmatpush3.bf16.msra.mxu1 %v1314_v8  ;;  %v471_v20 = vsel %vm464_vm3, %v466_v16, %v465_v15  ;;  %v462_v21 = vsel %vm443_vm4, 0.0, %v457_v19  ;;  %v467_v22 = vsel %vm464_vm3, %v465_v15, %v466_v16  ;;  %v1322_v19 = vld [vmem:[#allocation8 + $0x28] sm:$0xff]   ;;  %s1491_s10 = smov [#allocation9]  }
  0x61   : > { %1206 = vmatprep.subr.bf16.mxu0 %v1488_v1  ;;  %1214 = vmatprep.subr.bf16.mxu1 %v1488_v1  ;;  %v477_v23 = vsel %vm446_vm5, 0.0, %v471_v20  ;;  %v478_v24 = vpack.c.bf16 %v454_v18, %v462_v21  ;;  %p1415_p7 = pnand %p1414_p5, %p1871_p2  ;;  %s1417_s12 = sshll.u32 %s1491_s10, 4  ;;  %s1418_s12 = int_to_ptr.vmem [resolvable:$false] %s1417_s12 }
  0x62   : > { %v606_v25 = vpack.c.bf16 %v477_v23, %v467_v22  ;;  %s1419_s5 = scalar_lea.vmem %s1418_s12, 32  ;;  %p1420_p13 = scmp.lt.s32.totalorder %s1046_s26, %s1418_s12 }
  0x63   : > { %1195 = vmatmul.mubr.msk.bf16.vlgmr.msra.gmra.mxu0 %vm505_vm1, %v436_v9  ;;  %1203 = vmatmul.mubr.msk.bf16.vlgmr.msra.gmra.mxu1 %vm505_vm1, %v478_v24  ;;  %p1416_p12 = pneg %p1415_p7  ;;  %p1421_p0 = scmp.lt.s32.totalorder %s1419_s5, %s1413_s17 }
  0x64   : > { %1207 = vmatpush3.bf16.msra.mxu0 %v1316_v12  ;;  %1210 = vmatprep.mubr.msk.bf16.mxu0 %vm1489_vm0, %v1488_v1 }
  0x65   : > { %1208 = vmatprep.subr.bf16.mxu0 %v1488_v1  ;;  %1218 = vmatprep.mubr.msk.bf16.mxu1 %vm1489_vm0, %v1488_v1  ;;  %p1422_p10 = por %p1421_p0, %p1420_p13 }
  0x66   : > { %1215 = vmatpush3.bf16.msra.mxu1 %v1318_v59 }
  0x67   : > { %1216 = vmatprep.subr.bf16.mxu1 %v1488_v1  ;;  %p1423_p3 = pnand %p1422_p10, %p1416_p12 }
  0x68   : > { %1209 = vmatpush3.bf16.msra.mxu0 %v1317_v17 }
  0x69   : > { %1222 = vmatprep.subr.bf16.mxu0 %v1488_v1 }
  0x6a   : > { %1217 = vmatpush3.bf16.msra.mxu1 %v1319_v61 }
  0x6b   : > { %1211 = vmatmul.mubr.msk.bf16.vlgmr.msra.gmra.mxu0 %vm505_vm1, %v606_v25  ;;  %1230 = vmatprep.subr.bf16.mxu1 %v1488_v1 }
  0x6c   : > { %1226 = vmatprep.mubr.msk.bf16.mxu0 %vm1489_vm0, %v1488_v1  ;;  %1223 = vmatpush3.bf16.msra.mxu0 %v1320_v60 }
  0x6d   : > { %1224 = vmatprep.subr.bf16.mxu0 %v1488_v1 }
  0x70   : > { %1225 = vmatpush3.bf16.msra.mxu0 %v1321_v62 }
 0x123   : > { %v543_v26 = vpop.f32.mrf.mxu0  ;;  %v599_v28 = vpop.f32.mrf.mxu1 }
 0x124   : > { %v600_v32 = vadd.f32 %v599_v28, %v543_v26 }
 0x125   : > { %v1196_v27 = vpop.f32.mrf.mxu0  ;;  %v1204_v30 = vpop.f32.mrf.mxu1 }
 0x127   : > { %v546_v29 = vpop.f32.mrf.mxu0  ;;  %v602_v33 = vpop.f32.mrf.mxu1 }
 0x128   : > { %v603_v39 = vadd.f32 %v602_v33, %v546_v29  ;;  %v1323_v29 = vld [vmem:[#allocation8 + $0x20] sm:$0xff]  }
 0x129   : > { %v1197_v31 = vpop.f32.mrf.mxu0  ;;  %v1205_v37 = vpop.f32.mrf.mxu1 }
 0x12b   : > { %v661_v34 = vpop.f32.mrf.mxu0 }
 0x12c   : > { %v668_v36 = vadd.f32 %v661_v34, %v600_v32 }
 0x12d   : > { %v1212_v38 = vpop.f32.mrf.mxu0 }
 0x12e   : > { %v676_v40 = vadd.f32 %v1152_v35, %v668_v36 }
 0x12f   : > { %v664_v41 = vpop.f32.mrf.mxu0 }
 0x130   : > { %v669_v42 = vadd.f32 %v664_v41, %v603_v39  ;;  %v678_v43 = vmax.f32 %v676_v40, 0.0 }
 0x131   : > { %v1213_v44 = vpop.f32.mrf.mxu0 }
 0x132   : > { %v677_v45 = vadd.f32 %v1152_v35, %v669_v42  ;;  %v682_v46 = vsel %vm505_vm1, %v678_v43, 0.0 }
 0x133   : > { %683 = vadd.xlane.f32.xlu0 %v682_v46 }
 0x134   : > { %v679_v47 = vmax.f32 %v677_v45, 0.0 }
 0x136   : > { %v685_v48 = vsel %vm505_vm1, %v679_v47, 0.0 }
 0x137   : > { %686 = vadd.xlane.f32.xlu0 %v685_v48 }
 0x1bc   : > { %v684_v49 = vpop.xlane.xlu0 %683 }
 0x1bd   : > { %v689_v50 = vmul.f32 0.03125, %v684_v49 }
 0x1bf   : > { %v691_v51 = vsub.f32 %v678_v43, %v689_v50 }
 0x1c0   : > { %v687_v52 = vpop.xlane.xlu0 %686 }
 0x1c1   : > { %v690_v53 = vmul.f32 0.03125, %v687_v52  ;;  %v693_v54 = vmul.f32 %v691_v51, %v691_v51 }
 0x1c3   : > { %v692_v55 = vsub.f32 %v679_v47, %v690_v53  ;;  %v695_v56 = vsel %vm505_vm1, %v693_v54, 0.0 }
 0x1c4   : > { %696 = vadd.xlane.f32.xlu1 %v695_v56 }
 0x1c5   : > { %v694_v57 = vmul.f32 %v692_v55, %v692_v55 }
 0x1c7   : > { %v698_v58 = vsel %vm505_vm1, %v694_v57, 0.0 }
 0x1c8   : > { %699 = vadd.xlane.f32.xlu1 %v698_v58 }
 0x24d   : > { %v697_v63 = vpop.xlane.xlu1 %696 }
 0x24e   : > { %v701_v0 = vmul.f32 0.03125, %v697_v63 }
 0x250   : > { %v703_v3 = vadd.f32 1e-05, %v701_v0 }
 0x251   : > { %v700_v5 = vpop.xlane.xlu1 %699 }
 0x252   : > { %1325 = vrsqrt.f32 %v703_v3  ;;  %v702_v6 = vmul.f32 0.03125, %v700_v5  ;;  %v1490_v3 = vmov 0  }
 0x253   : > { %1310 = vset.pattern.permute.xlu0 %v1490_v3 }
 0x254   : > { %v704_v8 = vadd.f32 1e-05, %v702_v6 }
 0x256   : > { %1327 = vrsqrt.f32 %v704_v8 }
 0x25f   : > { %v1326_v9 = vpop.eup %1325 }
 0x260   : > { %v707_v11 = vmul.f32 %v1326_v9, %v691_v51 }
 0x262   : > { %v715_v12 = vmul.f32 %v1153_v10, %v707_v11 }
 0x263   : > { %v1328_v14 = vpop.eup %1327 }
 0x264   : > { %v708_v15 = vmul.f32 %v1328_v14, %v692_v55  ;;  %v723_v16 = vadd.f32 %v1154_v13, %v715_v12 }
 0x266   : > { %v716_v17 = vmul.f32 %v1153_v10, %v708_v15  ;;  %v730_v20 = vrot.slane %v723_v16, 7  ;;  %v737_v23 = vrot.slane %v723_v16, 1  ;;  %v1166_v15 = vld [vmem:[%s1842_s8] ss:$0 sm:$0xff] }
 0x268   : > { %v724_v18 = vadd.f32 %v1154_v13, %v716_v17  ;;  %v1165_v13 = vld [vmem:[%s1841_s7] ss:$0 sm:$0xff] }
 0x26a   : > { %v751_v21 = vpack.c.bf16 %v724_v18, %v723_v16  ;;  %v727_v22 = vrot.slane %v724_v18, 7  ;;  %v738_v24 = vrot.slane %v724_v18, 1  ;;  %v1167_v18 = vld [vmem:[%s1843_s9] ss:$0 sm:$0xff] }
 0x26c   : > { %1219 = vmatmul.mubr.msk.bf16.vlgmr.msra.gmra.mxu1 %vm505_vm1, %v751_v21  ;;  %v731_v25 = vsel %vm452_vm2, %v730_v20, %v727_v22  ;;  %v734_v26 = vsel %vm452_vm2, %v727_v22, %v730_v20  ;;  %v743_v27 = vsel %vm464_vm3, %v738_v24, %v737_v23  ;;  %v739_v31 = vsel %vm464_vm3, %v737_v23, %v738_v24 }
 0x26d   : > { %1231 = vmatpush3.bf16.msra.mxu1 %v1322_v19  ;;  %v735_v28 = vsel %vm443_vm4, 0.0, %v734_v26  ;;  %1234 = vmatprep.mubr.msk.bf16.mxu1 %vm1489_vm0, %v1488_v1  ;;  %v745_v32 = vsel %vm446_vm5, 0.0, %v743_v27  ;;  %v1002_v27 = vld [vmem:[#allocation2] sm:$0x1] }
 0x26e   : > { %v746_v30 = vpack.c.bf16 %v731_v25, %v735_v28  ;;  %1232 = vmatprep.subr.bf16.mxu1 %v1488_v1  ;;  %v869_v33 = vpack.c.bf16 %v745_v32, %v739_v31  ;;  %v1164_v1 = vld [vmem:[%s1840_s6] ss:$0 sm:$0xff]  ;;  %v1017_v28 = vand.u32 127, %v440_v2 }
 0x270   : > { %1227 = vmatmul.mubr.msk.bf16.vlgmr.msra.gmra.mxu0 %vm505_vm1, %v746_v30  ;;  %v1010_v30 = vsub.s32 0, %v1710_v4  ;;  %v1022_v31 = vadd.s32 4294967288, %v1017_v28 }
 0x271   : > { %1233 = vmatpush3.bf16.msra.mxu1 %v1323_v29 }
 0x274   : > { %1235 = vmatmul.mubr.msk.bf16.vlgmr.msra.gmra.mxu1 %vm505_vm1, %v869_v33  ;;  %v1020_v33 = vsub.s32 %v1017_v28, %v1710_v4 }
 0x32c   : > { %v806_v34 = vpop.f32.mrf.mxu1 }
 0x32e   : > { %v1220_v35 = vpop.f32.mrf.mxu1 }
 0x330   : > { %v809_v36 = vpop.f32.mrf.mxu1  ;;  %v862_v37 = vpop.f32.mrf.mxu0 }
 0x331   : > { %v863_v40 = vadd.f32 %v862_v37, %v806_v34  ;;  %v1025_v34 = vsub.s32 %v1022_v31, %v1710_v4 }
 0x332   : > { %v1221_v38 = vpop.f32.mrf.mxu1  ;;  %v1228_v39 = vpop.f32.mrf.mxu0 }
 0x334   : > { %v865_v41 = vpop.f32.mrf.mxu0  ;;  %v924_v7 = vpop.f32.mrf.mxu1 }
 0x335   : > { %v931_v42 = vadd.f32 %v924_v7, %v863_v40  ;;  %v866_v45 = vadd.f32 %v865_v41, %v809_v36 }
 0x336   : > { %v1229_v43 = vpop.f32.mrf.mxu0  ;;  %v1236_v44 = vpop.f32.mrf.mxu1 }
 0x337   : > { %v939_v46 = vadd.f32 %v1164_v1, %v931_v42 }
 0x338   : > { %v927_v47 = vpop.f32.mrf.mxu1 }
 0x339   : > { %v932_v48 = vadd.f32 %v927_v47, %v866_v45  ;;  %v941_v49 = vmax.f32 %v939_v46, 0.0 }
 0x33a   : > { %v1237_v50 = vpop.f32.mrf.mxu1 }
 0x33b   : > { %v940_v51 = vadd.f32 %v1164_v1, %v932_v48  ;;  %v945_v52 = vsel %vm505_vm1, %v941_v49, 0.0 }
 0x33c   : > { %946 = vadd.xlane.f32.xlu0 %v945_v52 }
 0x33d   : > { %v942_v53 = vmax.f32 %v940_v51, 0.0 }
 0x33f   : > { %v948_v54 = vsel %vm505_vm1, %v942_v53, 0.0 }
 0x340   : > { %949 = vadd.xlane.f32.xlu1 %v948_v54 }
 0x3c5   : > { %v947_v55 = vpop.xlane.xlu0 %946 }
 0x3c6   : > { %v951_v56 = vmul.f32 0.03125, %v947_v55 }
 0x3c8   : > { %v953_v57 = vsub.f32 %v941_v49, %v951_v56 }
 0x3c9   : > { %v950_v58 = vpop.xlane.xlu1 %949 }
 0x3ca   : > { %v952_v59 = vmul.f32 0.03125, %v950_v58  ;;  %v955_v60 = vmul.f32 %v953_v57, %v953_v57 }
 0x3cc   : > { %v954_v61 = vsub.f32 %v942_v53, %v952_v59  ;;  %v957_v62 = vsel %vm505_vm1, %v955_v60, 0.0 }
 0x3cd   : > { %958 = vadd.xlane.f32.xlu0 %v957_v62 }
 0x3ce   : > { %v956_v63 = vmul.f32 %v954_v61, %v954_v61 }
 0x3d0   : > { %v960_v0 = vsel %vm505_vm1, %v956_v63, 0.0 }
 0x3d1   : > { %961 = vadd.xlane.f32.xlu1 %v960_v0 }
 0x456   : > { %v959_v5 = vpop.xlane.xlu0 %958 }
 0x457   : > { %v963_v6 = vmul.f32 0.03125, %v959_v5 }
 0x459   : > { %v965_v8 = vadd.f32 1e-05, %v963_v6 }
 0x45a   : > { %v962_v9 = vpop.xlane.xlu1 %961 }
 0x45b   : > { %1329 = vrsqrt.f32 %v965_v8  ;;  %v964_v10 = vmul.f32 0.03125, %v962_v9 }
 0x45d   : > { %v966_v11 = vadd.f32 1e-05, %v964_v10 }
 0x45f   : > { %1331 = vrsqrt.f32 %v966_v11 }
 0x468   : > { %v1330_v12 = vpop.eup %1329 }
 0x469   : > { %v969_v14 = vmul.f32 %v1330_v12, %v953_v57 }
 0x46b   : > { %v977_v16 = vmul.f32 %v1165_v13, %v969_v14 }
 0x46c   : > { %v1332_v17 = vpop.eup %1331 }
 0x46d   : > { %v985_v19 = vadd.f32 %v1166_v15, %v977_v16  ;;  %v970_v20 = vmul.f32 %v1332_v17, %v954_v61 }
 0x46f   : > { %v994_v21 = vmul.f32 %v1167_v18, %v985_v19  ;;  %v978_v22 = vmul.f32 %v1165_v13, %v970_v20 }
 0x471   : > { %v996_v23 = vsel %vm505_vm1, %v994_v21, 0.0  ;;  %v986_v24 = vadd.f32 %v1166_v15, %v978_v22 }
 0x472   : > { %997 = vadd.xlane.f32.xlu0 %v996_v23 }
 0x473   : > { %v995_v25 = vmul.f32 %v1167_v18, %v986_v24 }
 0x475   : > { %v999_v26 = vsel %vm505_vm1, %v995_v25, 0.0 }
 0x476   : > { %1000 = vadd.xlane.f32.xlu1 %v999_v26 }
 0x488   : > { %1005 = vperm.xlu0 %1310, %v1002_v27  }
 0x4fb   : > { %v998_v29 = vpop.xlane.xlu0 %997 }
 0x4ff   : > { %v1001_v36 = vpop.xlane.xlu1 %1000 }
 0x503   : > { %v1006_v32 = vpop.permute.xlu0 %1005 }
 0x504   : > { %v1011_v35 = vrot.slane %v1006_v32, %v1010_v30 }
 0x506   : > { %v1012_v37 = vadd.f32 %v1011_v35, %v998_v29  ;;  %v1013_v38 = vadd.f32 %v1011_v35, %v1001_v36 }
 0x508   : > { %v1021_v2 = vrot.slane %v1012_v37, %v1020_v33  ;;  %v1026_v39 = vrot.slane %v1013_v38, %v1025_v34 }
 0x50a   : > { %v1028_v4 = vsel %vm1027_vm6, %v1026_v39, %v1021_v2 }
 0x50b   : > { %1031 = vst.msk [vmem:[%s434_s24] sm:$0x1] %vm1030_vm7, %v1028_v4 }
 0x50c   : > { %1426 = shalt.err (!%p1423_p3)
}
 0x50d   : > { %s1427_s23 = scalar_lea.hbm %s1797_s29, 16  ;;  %s1431_s18 = scalar_lea.hbm %s1845_s11, 32 }
 0x50e   : > { %p1428_p11 = scmp.ne.s32.totalorder %s1797_s29, %s1427_s23  ;;  %p1432_p4 = scmp.lt.s32.totalorder %s1797_s29, %s1845_s11 }
 0x50f   : > { %p1433_p6 = scmp.lt.s32.totalorder %s1431_s18, %s1427_s23 }
 0x510   : > { %p1429_p9 = pnand %p1428_p11, %p1871_p2 }
 0x511   : > { %p1434_p8 = por %p1433_p6, %p1432_p4 }
 0x512   : > { %p1430_p1 = pneg %p1429_p9 }
 0x514   : > { %p1435_p5 = pnand %p1434_p8, %p1430_p1 }
 0x516   : > { %1438 = shalt.err (!%p1435_p5)
}
 0x517   : > { %1248 = dma.vmem_to_hbm [thread:$0]  (%p1871_p2), %s1046_s26, 16, %s1797_s29, %s1033_s30  }
 0x518 PF: > { %s1057_s24 = sand.u32 1, %s1469_s19   ;;  %p1872_p7 = scmp.ne.s32.totalorder %s1857_s25, 0 }
 0x519   : > { %p1873_p12 = scmp.ge.s32.totalorder %s1481_s22, 2  ;;  %s1058_s14 = scalar_lea.sflag [#allocation5], %s1057_s24 }
 0x51b   : > { %p1262_p13 = pnand %p1873_p12, %p1872_p7 }
 0x51d   : > { %p1263_p0 = pneg %p1262_p13 }
 0x51f   : > { %1464 = dma.done.wait (%p1263_p0), %s1058_s14, 16  }
 0x520   : > { %1466 = vsyncadd (%p1263_p0), %s1058_s14, 4294967280  ;;  %s1874_s15 = sld [smem:[#allocation13_spill]]  ;;  %p27_p10 = scmp.ge.s32.totalorder %s1633_s28, 4  }
 0x521   : > { %s1875_s21 = sld [smem:[#allocation14_spill]]  ;;  %s1876_s19 = smov %s1473_s20 }
 0x522   : > { %s1878_s22 = smov %s1633_s28  ;;  %29 = sbr.rel (!%p27_p10) target bundleno = 9 (0x9), region = 121 }
 0x526   : > { %s1877_s20 = smov %s1874_s15 }
 0x527   :  { %1062 = vsyncpa [#allocation4], 1 }
 0x528   :  { %1064 = vsyncpa [#allocation4 + $0x1], 1 }
 0x529   :  { %1065 = vsyncpa [#allocation7], 1 }
 0x52a   :  { %1066 = vsyncpa [#allocation5], 1 }
 0x52b   :  { %1068 = vsyncpa [#allocation5 + $0x1], 1 }

</bundles_post_ra>
